<compile_context>
chip_gen: v7x
topology: tpu7x:2x2x1
jax: 0.10.0
libtpu: 0.0.40
codegen_flags: <defaults>
</compile_context>

<pallas_src>
import functools
import math

import jax
import jax.numpy as jnp
from jax.experimental import pallas as pl
from jax.experimental.pallas import tpu as pltpu


# ---------------------------------------------------------------------------
# Small helpers (host-side layout plumbing, no compute hoisting)
# ---------------------------------------------------------------------------
_BLOCK_BUDGET_BYTES = 16 << 20   # double-buffered row blocks + resident constants
_VMEM_LIMIT_BYTES = 32 << 20     # raise v5e's 16 MiB scoped default; <= physical on all gens
_MAX_ROW_TILE = 4096


def _cdiv(a, b):
    return -(-a // b)


def _round_up(x, m):
    return ((x + m - 1) // m) * m


def _round_down(x, m):
    return (x // m) * m


def _num_tensorcores():
    """2 on v7x (two TensorCores per chip), else 1.  Best effort, never raises."""
    try:
        kind = jax.devices()[0].device_kind.lower()
        if "v7" in kind:
            return 2
    except Exception:
        pass
    return 1


def _pick_row_tile(n_rows, row_bytes, const_bytes, num_cores, max_tile=_MAX_ROW_TILE):
    """Biggest row tile whose double-buffered in+out blocks (+ constants) fit the VMEM
    budget.  1-TC chips: one full block when possible (grid is a serial loop, splitting
    only adds ~0.35us/step overhead).  2-TC chips: >= 2 balanced blocks for 'parallel'."""
    if n_rows <= 8:
        return n_rows
    budget = max(1, _BLOCK_BUDGET_BYTES - 2 * const_bytes)
    budget_rows = max(8, _round_down(budget // (2 * max(1, row_bytes)), 8))
    tile = min(max_tile, budget_rows)
    if num_cores >= 2:
        tile = min(tile, max(8, _round_up(_cdiv(n_rows, num_cores), 8)))
    if n_rows <= tile:
        return n_rows                      # single full-size block (always legal)
    return tile


def _pack_rows(x, pack):
    """(N, d) -> (ceil(N/pack), pack*d): `pack` consecutive logical rows per physical row.
    Row-major contiguous, so the inverse reshape on the output is free.  The jnp.pad only
    triggers when N % pack != 0 (one extra pass over x); callers should prefer N % pack == 0."""
    if pack == 1:
        return x
    n, d = x.shape
    pad = (-n) % pack
    if pad:
        x = jnp.pad(x, ((0, pad), (0, 0)))
    return x.reshape((n + pad) // pack, pack * d)


def _pack_weight(w, pack):
    """Block-diagonal replication: blockdiag(w, ..., w) with `pack` copies."""
    if pack == 1:
        return w
    return jnp.kron(jnp.eye(pack, dtype=w.dtype), w)


# ---------------------------------------------------------------------------
# Pallas kernels
# ---------------------------------------------------------------------------
def _mlp_kernel(x_ref, w1_ref, b1_ref, w2_ref, b2_ref, o_ref, *, precision):
    """nn.Sequential(Linear, ReLU, Linear) on one (lane-packed) row tile."""
    x = x_ref[...]                                                    # (tile, pack*d_in)
    h = jnp.dot(x, w1_ref[...], precision=precision,
                preferred_element_type=jnp.float32) + b1_ref[...]
    h = jnp.maximum(h, 0.0)                                           # ReLU
    o = jnp.dot(h, w2_ref[...], precision=precision,
                preferred_element_type=jnp.float32) + b2_ref[...]
    o_ref[...] = o.astype(o_ref.dtype)


def _sincos_kernel(x_ref, r_ref, even_ref, o_ref):
    """SinuPosEncoding on one (lane-packed) row tile.

    r_ref fuses the per-coordinate repeat and div_term scale into one tiny matmul:
        mult[:, j] = coords[:, j // per] * div_term[j]
    even_ref is a {1,0} row selecting sin (even j) vs cos (odd j) — exact torch semantics.
    """
    mult = jnp.dot(x_ref[...], r_ref[...], precision=jax.lax.Precision.HIGHEST,
                   preferred_element_type=jnp.float32)
    pe = jnp.where(even_ref[...] > 0.5, jnp.sin(mult), jnp.cos(mult))
    o_ref[...] = pe.astype(o_ref.dtype)


# ---------------------------------------------------------------------------
# Generic row-tiled pallas_call wrapper
# ---------------------------------------------------------------------------
def _row_mapped_call(kernel, xp, consts, d_out2, num_cores, out_dtype):
    """Run `kernel(row_block, *const_blocks, out_block)` over row tiles of xp."""
    n2, d_in2 = xp.shape
    const_bytes = sum(int(c.size) * c.dtype.itemsize for c in consts)
    row_bytes = d_in2 * xp.dtype.itemsize + d_out2 * jnp.dtype(out_dtype).itemsize
    row_tile = _pick_row_tile(n2, row_bytes, const_bytes, num_cores)
    grid = (pl.cdiv(n2, row_tile),)

    in_specs = [pl.BlockSpec((row_tile, d_in2), lambda i: (i, 0))]
    for c in consts:
        # Constant blocks: full extent, same block every step -> fetched once.
        in_specs.append(pl.BlockSpec(c.shape, lambda i: (0, 0)))

    return pl.pallas_call(
        kernel,
        out_shape=jax.ShapeDtypeStruct((n2, d_out2), out_dtype),
        grid_spec=pltpu.PrefetchScalarGridSpec(
            num_scalar_prefetch=0,
            grid=grid,
            in_specs=in_specs,
            out_specs=pl.BlockSpec((row_tile, d_out2), lambda i: (i, 0)),
        ),
        compiler_params=pltpu.CompilerParams(
            dimension_semantics=("parallel",),
            vmem_limit_bytes=_VMEM_LIMIT_BYTES,
        ),
    )(xp, *consts)


def mlp_motion_token_mapper(coords, w1p, b1p, w2p, b2p, pack, d_out, *,
                            num_cores=1, out_dtype=jnp.float32,
                            precision=jax.lax.Precision.HIGHEST):
    """coords: (N, d_in) -> (N, d_out) via Linear/ReLU/Linear (weights pre-packed)."""
    n = coords.shape[0]
    xp = _pack_rows(coords.astype(jnp.float32), pack)
    kern = functools.partial(_mlp_kernel, precision=precision)
    out = _row_mapped_call(kern, xp, (w1p, b1p, w2p, b2p), w2p.shape[1],
                           num_cores, out_dtype)
    # (n2, pack*d_out) row-major == per-logical-row outputs back to back -> free unpack.
    # Keep the [:n] slice: padded rows carry bias-derived garbage through the MLP.
    return out.reshape(-1, d_out)[:n]


def sincos_motion_token_mapper(coords, rp, evenp, pack, d_output, *,
                               num_cores=1, out_dtype=jnp.float32):
    """SinuPosEncoding on flattened coords: (N, d_coords) -> (N, d_output)."""
    n = coords.shape[0]
    xp = _pack_rows(coords.astype(jnp.float32), pack)
    out = _row_mapped_call(_sincos_kernel, xp, (rp, evenp), rp.shape[1],
                           num_cores, out_dtype)
    return out.reshape(-1, d_output)[:n]


# ---------------------------------------------------------------------------
# PatchPosEncoder (non-perceiver paths)
# ---------------------------------------------------------------------------
class PatchPosEncoder:
    def __init__(self, model_type="mlp", use_bounding_box=False,
                 vision_width=64, num_frames=8, key=None,
                 out_dtype=jnp.float32,
                 mlp_precision=jax.lax.Precision.HIGHEST):
        self.model_type = model_type
        self.vision_width = vision_width
        self.num_frames = num_frames
        self.input_dim = (4 if use_bounding_box else 2) * num_frames
        self.out_dtype = out_dtype
        self.mlp_precision = mlp_precision
        self.num_cores = _num_tensorcores()

        if model_type == "mlp":
            # nn.Linear(input_dim, vision_width//4), ReLU, nn.Linear(vision_width//4, vision_width)
            hid = vision_width // 4
            k1, k2, k3, k4 = jax.random.split(key, 4)
            lim1 = 1.0 / math.sqrt(self.input_dim)
            lim2 = 1.0 / math.sqrt(hid)
            self.w1 = jax.random.uniform(k1, (self.input_dim, hid), jnp.float32, -lim1, lim1)
            self.b1 = jax.random.uniform(k2, (1, hid), jnp.float32, -lim1, lim1)
            self.w2 = jax.random.uniform(k3, (hid, vision_width), jnp.float32, -lim2, lim2)
            self.b2 = jax.random.uniform(k4, (1, vision_width), jnp.float32, -lim2, lim2)
            # Lane-pack on the narrowest activation so hidden AND output are lane-full.
            self.pack = max(1, 128 // min(hid, vision_width))
            self._w1p = _pack_weight(self.w1, self.pack)
            self._b1p = jnp.tile(self.b1, (1, self.pack))
            self._w2p = _pack_weight(self.w2, self.pack)
            self._b2p = jnp.tile(self.b2, (1, self.pack))
        elif model_type == "sincos":
            assert vision_width % self.input_dim == 0  # mirrors the torch assert
            d, d_out = self.input_dim, vision_width
            per = d_out // d
            # R[c, j] = div_term[j] if (j // per) == c else 0 : fuses the torch
            # coords.unsqueeze(2).expand(...).reshape(...) repeat AND the div_term scale
            # into one tiny matmul — no (N, d_out) intermediate ever hits HBM.
            idx = jnp.arange(d_out, dtype=jnp.float32)
            div = jnp.exp((-math.log(10000.0) / float(d_out)) * idx)
            sel = (jnp.arange(d_out) // per)[None, :] == jnp.arange(d)[:, None]
            r = jnp.where(sel, div[None, :], 0.0).astype(jnp.float32)       # (d, d_out)
            even = ((jnp.arange(d_out) % 2) == 0).astype(jnp.float32)[None, :]
            self.pack = max(1, 128 // d_out)
            self._rp = _pack_weight(r, self.pack)
            self._evenp = jnp.tile(even, (1, self.pack))
        else:
            # TODO(synk): 'perceiver' model_type needs PerceiverResampler (not provided).
            raise NotImplementedError(model_type)

        # jit end-to-end: packing reshape/pad, the pallas_call and the unpack fuse into
        # one dispatch; the hoisted constants are baked in once and cached.
        self._forward = jax.jit(self._forward_impl)

    def _forward_impl(self, video_graph):
        b, m, t = video_graph.shape
        # torch: 'b m t' -> 'b m t 1' -> 'b M (t 1)' == video_graph; flatten rows.
        # padding_mask / all_ones_rows are only consumed by the perceiver branch.
        coords = video_graph.reshape(b * m, t).astype(jnp.float32)
        if self.model_type == "mlp":
            out = mlp_motion_token_mapper(
                coords, self._w1p, self._b1p, self._w2p, self._b2p,
                self.pack, self.vision_width,
                num_cores=self.num_cores, out_dtype=self.out_dtype,
                precision=self.mlp_precision)
        else:  # sincos
            out = sincos_motion_token_mapper(
                coords, self._rp, self._evenp, self.pack, self.vision_width,
                num_cores=self.num_cores, out_dtype=self.out_dtype)
        return out.reshape(b, m, self.vision_width)

    def __call__(self, video_graph, segmasks=None):
        assert video_graph.shape[-1] == self.input_dim
        return self._forward(video_graph)


# ---------------------------------------------------------------------------
# Pure-JAX references (silent correctness check)
# ---------------------------------------------------------------------------
def _mlp_ref(coords, w1, b1, w2, b2):
    h = jnp.maximum(jnp.dot(coords, w1, precision="highest") + b1, 0.0)
    return jnp.dot(h, w2, precision="highest") + b2


def _sincos_ref(coords, d_output):
    n, d = coords.shape
    per = d_output // d
    xe = jnp.repeat(coords, per, axis=1)
    idx = jnp.arange(d_output, dtype=jnp.float32)
    div = jnp.exp(-math.log(10000.0) * idx / d_output)
    mult = xe * div[None, :]
    even = (jnp.arange(d_output) % 2) == 0
    return jnp.where(even[None, :], jnp.sin(mult), jnp.cos(mult))


if __name__ == "__main__":
    key = jax.random.PRNGKey(0)
    k_data, k_param, k_big = jax.random.split(key, 3)

    B, M, num_frames, vision_width = 2, 4, 8, 64
    T = 2 * num_frames  # use_bounding_box=False -> input_dim = 2*num_frames
    video_graph = jax.random.uniform(k_data, (B, M, T), jnp.float32, 0.1, 1.0)
    segmasks = jnp.zeros((B, M, 16, 16), jnp.float32)  # unused by non-perceiver forward

    # --- 'mlp' model_type (small) ---
    enc_mlp = PatchPosEncoder("mlp", vision_width=vision_width,
                              num_frames=num_frames, key=k_param)
    out_mlp = jax.block_until_ready(enc_mlp(video_graph, segmasks))
    assert out_mlp.shape == (B, M, vision_width)
    ref_mlp = _mlp_ref(video_graph.reshape(B * M, T),
                       enc_mlp.w1, enc_mlp.b1, enc_mlp.w2, enc_mlp.b2
                       ).reshape(B, M, vision_width)
    assert jnp.allclose(out_mlp, ref_mlp, atol=1e-5, rtol=1e-5)

    # --- 'sincos' model_type (small) ---
    enc_sc = PatchPosEncoder("sincos", vision_width=vision_width,
                             num_frames=num_frames, key=k_param)
    out_sc = jax.block_until_ready(enc_sc(video_graph, segmasks))
    assert out_sc.shape == (B, M, vision_width)
    ref_sc = _sincos_ref(video_graph.reshape(B * M, T),
                         vision_width).reshape(B, M, vision_width)
    assert jnp.allclose(out_sc, ref_sc, atol=1e-5, rtol=1e-5)

    # --- medium N: exercises row packing with padding, large/split row tiles ---
    Mb = 515  # B*Mb = 1030 rows; not a multiple of pack=8 -> pad path covered
    vg_big = jax.random.uniform(k_big, (B, Mb, T), jnp.float32, 0.1, 1.0)
    out_big_mlp = jax.block_until_ready(enc_mlp(vg_big))
    ref_big_mlp = _mlp_ref(vg_big.reshape(B * Mb, T),
                           enc_mlp.w1, enc_mlp.b1, enc_mlp.w2, enc_mlp.b2
                           ).reshape(B, Mb, vision_width)
    assert jnp.allclose(out_big_mlp, ref_big_mlp, atol=1e-5, rtol=1e-5)
    out_big_sc = jax.block_until_ready(enc_sc(vg_big))
    ref_big_sc = _sincos_ref(vg_big.reshape(B * Mb, T),
                             vision_width).reshape(B, Mb, vision_width)
    assert jnp.allclose(out_big_sc, ref_big_sc, atol=1e-5, rtol=1e-5)

    print("KERNEL_OK")
</pallas_src>

<mosaic_0001>
module attributes {stable_mosaic.version = 11 : i64} {
  func.func @_mlp_kernel(%arg0: i32, %arg1: memref<1x128xf32, #tpu.memory_space<vmem>>, %arg2: memref<128x128xf32, #tpu.memory_space<vmem>>, %arg3: memref<1x128xf32, #tpu.memory_space<vmem>>, %arg4: memref<128x512xf32, #tpu.memory_space<vmem>>, %arg5: memref<1x512xf32, #tpu.memory_space<vmem>>, %arg6: memref<1x512xf32, #tpu.memory_space<vmem>>) attributes {dimension_semantics = [#tpu.dimension_semantics<parallel>], iteration_bounds = array<i64: 1>, scalar_prefetch = 0 : i64, scratch_operands = 0 : i64, tpu.core_type = #tpu.core_type<tc>, window_params = [{transform_indices = @transform_0, window_bounds = array<i64: 1, 128>}, {pipeline_mode = #tpu.pipeline_mode<synchronous>, transform_indices = @transform_1, window_bounds = array<i64: 128, 128>}, {pipeline_mode = #tpu.pipeline_mode<synchronous>, transform_indices = @transform_2, window_bounds = array<i64: 1, 128>}, {pipeline_mode = #tpu.pipeline_mode<synchronous>, transform_indices = @transform_3, window_bounds = array<i64: 128, 512>}, {pipeline_mode = #tpu.pipeline_mode<synchronous>, transform_indices = @transform_4, window_bounds = array<i64: 1, 512>}, {transform_indices = @transform_5, window_bounds = array<i64: 1, 512>}]} {
    %c0 = arith.constant 0 : index
    %c0_0 = arith.constant 0 : index
    %0 = vector.load %arg1[%c0, %c0_0] : memref<1x128xf32, #tpu.memory_space<vmem>>, vector<1x128xf32>
    %c0_1 = arith.constant 0 : index
    %c0_2 = arith.constant 0 : index
    %1 = vector.load %arg2[%c0_1, %c0_2] : memref<128x128xf32, #tpu.memory_space<vmem>>, vector<128x128xf32>
    %cst = arith.constant dense<0.000000e+00> : vector<1x128xf32>
    %2 = tpu.matmul %0, %1, %cst {dimension_numbers = #tpu.dot_dimension_numbers<[1], [0], [0], [1], [0, 0, 1, 1], [], []>, precision = #tpu.contract_precision<fp32>} : vector<1x128xf32>, vector<128x128xf32>, vector<1x128xf32> -> vector<1x128xf32>
    %c0_3 = arith.constant 0 : index
    %c0_4 = arith.constant 0 : index
    %3 = vector.load %arg3[%c0_3, %c0_4] : memref<1x128xf32, #tpu.memory_space<vmem>>, vector<1x128xf32>
    %4 = arith.addf %2, %3 : vector<1x128xf32>
    %cst_5 = arith.constant 0.000000e+00 : f32
    %5 = vector.broadcast %cst_5 : f32 to vector<1x128xf32>
    %6 = arith.maximumf %4, %5 : vector<1x128xf32>
    %c0_6 = arith.constant 0 : index
    %c0_7 = arith.constant 0 : index
    %7 = vector.load %arg4[%c0_6, %c0_7] : memref<128x512xf32, #tpu.memory_space<vmem>>, vector<128x512xf32>
    %cst_8 = arith.constant dense<0.000000e+00> : vector<1x512xf32>
    %8 = tpu.matmul %6, %7, %cst_8 {dimension_numbers = #tpu.dot_dimension_numbers<[1], [0], [0], [1], [0, 0, 1, 1], [], []>, precision = #tpu.contract_precision<fp32>} : vector<1x128xf32>, vector<128x512xf32>, vector<1x512xf32> -> vector<1x512xf32>
    %c0_9 = arith.constant 0 : index
    %c0_10 = arith.constant 0 : index
    %9 = vector.load %arg5[%c0_9, %c0_10] : memref<1x512xf32, #tpu.memory_space<vmem>>, vector<1x512xf32>
    %10 = arith.addf %8, %9 : vector<1x512xf32>
    %c0_11 = arith.constant 0 : index
    %c0_12 = arith.constant 0 : index
    %11 = vector.load %arg6[%c0_11, %c0_12] : memref<1x512xf32, #tpu.memory_space<vmem>>, vector<1x512xf32>
    tpu.vector_store %arg6[%c0_11, %c0_12], %10 {strides = array<i32>} : memref<1x512xf32, #tpu.memory_space<vmem>>, vector<1x512xf32>,
    return
  }
  func.func @transform_0(%arg0: i32) -> (i32, i32) {
    %c0_i32 = arith.constant 0 : i32
    %c0_i32_0 = arith.constant 0 : i32
    return %arg0, %c0_i32 : i32, i32
  }
  func.func @transform_1(%arg0: i32) -> (i32, i32) {
    %c0_i32 = arith.constant 0 : i32
    %c0_i32_0 = arith.constant 0 : i32
    %c0_i32_1 = arith.constant 0 : i32
    return %c0_i32, %c0_i32_0 : i32, i32
  }
  func.func @transform_2(%arg0: i32) -> (i32, i32) {
    %c0_i32 = arith.constant 0 : i32
    %c0_i32_0 = arith.constant 0 : i32
    %c0_i32_1 = arith.constant 0 : i32
    return %c0_i32, %c0_i32_0 : i32, i32
  }
  func.func @transform_3(%arg0: i32) -> (i32, i32) {
    %c0_i32 = arith.constant 0 : i32
    %c0_i32_0 = arith.constant 0 : i32
    %c0_i32_1 = arith.constant 0 : i32
    return %c0_i32, %c0_i32_0 : i32, i32
  }
  func.func @transform_4(%arg0: i32) -> (i32, i32) {
    %c0_i32 = arith.constant 0 : i32
    %c0_i32_0 = arith.constant 0 : i32
    %c0_i32_1 = arith.constant 0 : i32
    return %c0_i32, %c0_i32_0 : i32, i32
  }
  func.func @transform_5(%arg0: i32) -> (i32, i32) {
    %c0_i32 = arith.constant 0 : i32
    %c0_i32_0 = arith.constant 0 : i32
    return %arg0, %c0_i32 : i32, i32
  }
}

</mosaic_0001>

<bundles_post_ra>
// kernel: _forward_impl.1
= control target key start
LH: loop header
LB: loop body
LE: loop exit
PB: predicated region body
PF: predicated region fallthrough
CT: control target
= control target key end

     0   :  { %10 = vsyncpa [#allocation3], 0  ;;  %s5159_s0 = inlined_call_operand.vmem [shape: f32[1,128], index: 0, kind: input, shape index: {}]   ;;  %s5160_s1 = inlined_call_operand.hbm [shape: f32[128,128], index: 1, kind: input, shape index: {}]   ;;  %s5161_s2 = inlined_call_operand.vmem [shape: f32[1,128], index: 2, kind: input, shape index: {}]   ;;  %s5162_s3 = inlined_call_operand.hbm [shape: f32[128,512], index: 3, kind: input, shape index: {}]   ;;  %s5163_s4 = inlined_call_operand.vmem [shape: f32[1,512], index: 4, kind: input, shape index: {}]   ;;  %s5164_s5 = inlined_call_operand.vmem [shape: f32[1,512], index: 5, kind: output, shape index: {}]  }
   0x1   :  { %11 = vsyncpa [#allocation5], 0  ;;  %s3476_s18 = smov [#allocation2]   ;;  %s3428_s22 = scalar_lea.hbm %s5160_s1, 2048 }
   0x2   :  { %s19_s19 = sshll.u32 %s3476_s18, 4  ;;  %p3429_p0 = scmp.ne.s32.totalorder %s5160_s1, %s3428_s22  ;;  %s20_s19 = int_to_ptr.vmem [resolvable:$true] %s19_s19 }
   0x3   :  { %p3432_p1 = scmp.lt.u32.totalorder %s3428_s22, %s5160_s1 }
   0x5   :  { %p3434_p2 = pnand %p3432_p1, %p3429_p0 }
   0x7   :  { %3437 = shalt.err (!%p3434_p2)
}
   0x8   :  { %s3438_s27 = scalar_lea.vmem %s20_s19, 2048  ;;  %p3443_p4 = scmp.lt.s32.totalorder %s20_s19, %s20_s19 }
   0x9   :  { %p3439_p3 = scmp.ne.s32.totalorder %s20_s19, %s3438_s27  ;;  %p3444_p5 = scmp.lt.s32.totalorder %s3438_s27, %s3438_s27 }
   0xb   :  { %p3445_p6 = por %p3444_p5, %p3443_p4 }
   0xd   :  { %p3446_p7 = pnand %p3445_p6, %p3439_p3 }
   0xf   :  { %3449 = shalt.err (!%p3446_p7)
}
  0x10   :  { %s3477_s28 = smov 128   ;;  %s3478_s29 = smov 8  }
  0x11   :  { %25 = dma.hbm_to_vmem [thread:$0]  %s5160_s1, 2048, %s20_s19, [#allocation3], %s3477_s28, %s3477_s28, %s3478_s29  }
  0x12   :  { %s3479_s7 = smov [#allocation4]   ;;  %s3450_s11 = scalar_lea.hbm %s5162_s3, 8192 }
  0x13   :  { %s33_s8 = sshll.u32 %s3479_s7, 4  ;;  %p3451_p8 = scmp.ne.s32.totalorder %s5162_s3, %s3450_s11  ;;  %s34_s8 = int_to_ptr.vmem [resolvable:$true] %s33_s8 }
  0x14   :  { %p3454_p9 = scmp.lt.u32.totalorder %s3450_s11, %s5162_s3 }
  0x16   :  { %p3456_p10 = pnand %p3454_p9, %p3451_p8 }
  0x18   :  { %3459 = shalt.err (!%p3456_p10)
}
  0x19   :  { %s3460_s16 = scalar_lea.vmem %s34_s8, 8192  ;;  %p3465_p12 = scmp.lt.s32.totalorder %s34_s8, %s34_s8 }
  0x1a   :  { %p3461_p11 = scmp.ne.s32.totalorder %s34_s8, %s3460_s16  ;;  %p3466_p13 = scmp.lt.s32.totalorder %s3460_s16, %s3460_s16 }
  0x1c   :  { %p3467_p0 = por %p3466_p13, %p3465_p12 }
  0x1e   :  { %p3468_p1 = pnand %p3467_p0, %p3461_p11 }
  0x20   :  { %3471 = shalt.err (!%p3468_p1)
}
  0x21   :  { %s3480_s1 = smov 512   ;;  %s3481_s17 = smov 32  }
  0x22   :  { %39 = dma.hbm_to_vmem [thread:$0]  %s5162_s3, 8192, %s34_s8, [#allocation5], %s3480_s1, %s3480_s1, %s3481_s17  }
  0x23   :  { %3472 = dma.done.wait [#allocation3], 2048  }
  0x24   :  { %3473 = vsyncadd [#allocation3], 4294965248 }
  0x25   :  { %3474 = dma.done.wait [#allocation5], 8192  }
  0x26   :  { %3475 = vsyncadd [#allocation5], 4294959104  ;;  %v5172_v0 = vmov 0.0|0.0   ;;  %vm3483_vm0 = vmmov 0   ;;  %v5167_v1 = vmov 0.0   ;;  %v49_v2 = vld [vmem:[#allocation2] sm:$0xff] }
  0x27   :  { %2856 = vmatprep.subr.bf16.mxu1 %v5172_v0  ;;  %2928 = vmatprep.subr.bf16.mxu0 %v5172_v0  ;;  %v50_v3 = vld [vmem:[#allocation2 + $0x8] sm:$0xff]  ;;  %v51_v4 = vld [vmem:[#allocation2 + $0x10] sm:$0xff]  ;;  %v67_v5 = vand.u32 4294901760, %v49_v2  ;;  %v52_v7 = vld [vmem:[#allocation2 + $0x18] sm:$0xff] }
  0x28   :  { %2678 = vmatprep.mubr.msk.f32.mxu1 %vm3483_vm0, %v5167_v1  ;;  %2783 = vmatprep.mubr.msk.f32.mxu0 %vm3483_vm0, %v5167_v1  ;;  %v70_v6 = vand.u32 4294901760, %v50_v3  ;;  %v73_v8 = vand.u32 4294901760, %v51_v4  ;;  %v76_v9 = vand.u32 4294901760, %v52_v7  ;;  %v53_v10 = vld [vmem:[#allocation2 + $0x20] sm:$0xff]  ;;  %v54_v11 = vld [vmem:[#allocation2 + $0x28] sm:$0xff]  ;;  %v55_v16 = vld [vmem:[#allocation2 + $0x30] sm:$0xff] }
  0x29   :  { %v79_v14 = vand.u32 4294901760, %v53_v10  ;;  %v82_v15 = vand.u32 4294901760, %v54_v11  ;;  %v56_v17 = vld [vmem:[#allocation2 + $0x38] sm:$0xff]  ;;  %v85_v19 = vand.u32 4294901760, %v55_v16  ;;  %v48_v21 = vld [vmem:[%s5159_s0] sm:$0x1]  ;;  %v3563_v24 = vsub.f32 %v49_v2, %v67_v5 }
  0x2a   :  { %v3546_v12 = vpack.c.bf16 %v70_v6, %v67_v5  ;;  %v3550_v13 = vpack.c.bf16 %v76_v9, %v73_v8  ;;  %v88_v20 = vand.u32 4294901760, %v56_v17  ;;  %v57_v22 = vld [vmem:[#allocation2 + $0x40] sm:$0xff]  ;;  %v58_v23 = vld [vmem:[#allocation2 + $0x48] sm:$0xff]  ;;  %v3565_v25 = vsub.f32 %v50_v3, %v70_v6  ;;  %v59_v29 = vld [vmem:[#allocation2 + $0x50] sm:$0xff] }
  0x2b   :  { %v3556_v18 = vpack.c.bf16 %v82_v15, %v79_v14  ;;  %v3567_v26 = vsub.f32 %v51_v4, %v73_v8  ;;  %v3569_v27 = vsub.f32 %v52_v7, %v76_v9  ;;  %v3571_v28 = vsub.f32 %v53_v10, %v79_v14  ;;  %v60_v30 = vld [vmem:[#allocation2 + $0x58] sm:$0xff]  ;;  %v61_v38 = vld [vmem:[#allocation2 + $0x60] sm:$0xff]  ;;  %v62_v40 = vld [vmem:[#allocation2 + $0x68] sm:$0xff] }
  0x2c   :  { %2858 = vmatpush3.bf16.msra.mxu1 %v3546_v12  ;;  %2930 = vmatpush3.bf16.msra.mxu0 %v3546_v12  ;;  %v3573_v31 = vand.u32 4294901760, %v48_v21  ;;  %v3576_v32 = vsub.f32 %v54_v11, %v82_v15  ;;  %v3579_v33 = vpack.c.bf16 %v88_v20, %v85_v19  ;;  %v91_v34 = vand.u32 4294901760, %v57_v22  ;;  %v63_v56 = vld [vmem:[#allocation2 + $0x70] sm:$0xff]  ;;  %v64_v57 = vld [vmem:[#allocation2 + $0x78] sm:$0xff] }
  0x2d   :  { %2859 = vmatprep.subr.bf16.mxu1 %v5172_v0  ;;  %2931 = vmatprep.subr.bf16.mxu0 %v5172_v0  ;;  %v94_v35 = vand.u32 4294901760, %v58_v23  ;;  %v97_v36 = vand.u32 4294901760, %v59_v29  ;;  %v100_v37 = vand.u32 4294901760, %v60_v30  ;;  %v160_v39 = vand.u32 4294901760, %v3563_v24  ;;  %v3729_v1 = vld [vmem:[#allocation4 + $0x58] sm:$0xff] }
  0x2e   :  { %v3585_v41 = vsub.f32 %v48_v21, %v3573_v31  ;;  %v167_v42 = vand.u32 4294901760, %v3565_v25  ;;  %v174_v43 = vand.u32 4294901760, %v3567_v26  ;;  %v181_v44 = vand.u32 4294901760, %v3569_v27  ;;  %5432 = vst [vmem:[#allocation16_spill] sm:$0xff] %v3729_v1 }
  0x2f   :  { %v3591_v45 = vsub.f32 %v55_v16, %v85_v19  ;;  %v3594_v46 = vpack.c.bf16 %v94_v35, %v91_v34  ;;  %v188_v47 = vand.u32 4294901760, %v3571_v28  ;;  %v195_v48 = vand.u32 4294901760, %v3576_v32 }
  0x30   :  { %2861 = vmatpush3.bf16.msra.mxu1 %v3550_v13  ;;  %2933 = vmatpush3.bf16.msra.mxu0 %v3550_v13  ;;  %5424 = vst [vmem:[#allocation8_spill] sm:$0xff] %v3585_v41  ;;  %v3598_v49 = vsub.f32 %v56_v17, %v88_v20  ;;  %v3602_v50 = vsub.f32 %v57_v22, %v91_v34  ;;  %v103_v52 = vand.u32 4294901760, %v61_v38  ;;  %v106_v55 = vand.u32 4294901760, %v62_v40  ;;  %v3651_v34 = vld [vmem:[#allocation4 + $0x8] sm:$0xff] }
  0x31   :  { %2862 = vmatprep.subr.bf16.mxu1 %v5172_v0  ;;  %2934 = vmatprep.subr.bf16.mxu0 %v5172_v0  ;;  %v3604_v51 = vsub.f32 %v58_v23, %v94_v35  ;;  %v3606_v53 = vpack.c.bf16 %v100_v37, %v97_v36  ;;  %v3608_v54 = vsub.f32 %v59_v29, %v97_v36  ;;  %v5171_v59 = vand.u32 4294901760, %v3585_v41 }
  0x32   :  { %v161_v58 = vsub.f32 %v3563_v24, %v160_v39  ;;  %v168_v60 = vsub.f32 %v3565_v25, %v167_v42  ;;  %v175_v61 = vsub.f32 %v3567_v26, %v174_v43  ;;  %v182_v62 = vsub.f32 %v3569_v27, %v181_v44 }
  0x33   :  { %v3617_v63 = vsub.f32 %v60_v30, %v100_v37  ;;  %v189_v2 = vsub.f32 %v3571_v28, %v188_v47  ;;  %v196_v3 = vsub.f32 %v3576_v32, %v195_v48  ;;  %v109_v4 = vand.u32 4294901760, %v63_v56 }
  0x34   :  { %2864 = vmatpush3.bf16.msra.mxu1 %v3556_v18  ;;  %2936 = vmatpush3.bf16.msra.mxu0 %v3556_v18  ;;  %v112_v5 = vand.u32 4294901760, %v64_v57  ;;  %v202_v6 = vand.u32 4294901760, %v3591_v45  ;;  %v209_v7 = vand.u32 4294901760, %v3598_v49  ;;  %v3625_v8 = vpack.c.bf16 %v106_v55, %v103_v52 }
  0x35   :  { %2865 = vmatprep.subr.bf16.mxu1 %v5172_v0  ;;  %2937 = vmatprep.subr.bf16.mxu0 %v5172_v0  ;;  %v3627_v9 = vsub.f32 %v61_v38, %v103_v52  ;;  %v3629_v10 = vsub.f32 %v62_v40, %v106_v55  ;;  %v162_v11 = vand.u32 4294901760, %v161_v58  ;;  %v3634_v14 = vsub.f32 %v3585_v41, %v5171_v59  ;;  %v3661_v40 = vld [vmem:[#allocation4 + $0x28] sm:$0xff]  ;;  %v3749_v59 = vld [vmem:[#allocation4 + $0x40] sm:$0xff] }
  0x36   :  { %v169_v15 = vand.u32 4294901760, %v168_v60  ;;  %v176_v16 = vand.u32 4294901760, %v175_v61  ;;  %v183_v17 = vand.u32 4294901760, %v182_v62  ;;  %v3638_v19 = vsub.f32 %v63_v56, %v109_v4  ;;  %v3668_v60 = vld [vmem:[#allocation4 + $0x18] sm:$0xff] }
  0x37   :  { %v190_v20 = vand.u32 4294901760, %v189_v2  ;;  %v197_v21 = vand.u32 4294901760, %v196_v3  ;;  %v216_v22 = vand.u32 4294901760, %v3602_v50  ;;  %v3643_v23 = vpack.c.bf16 %v112_v5, %v109_v4  ;;  %v3670_v61 = vld [vmem:[#allocation4 + $0x38] sm:$0xff]  ;;  %v3691_v4 = vld [vmem:[#allocation4 + $0x10] sm:$0xff] }
  0x38   :  { %2867 = vmatpush3.bf16.msra.mxu1 %v3579_v33  ;;  %2939 = vmatpush3.bf16.msra.mxu0 %v3579_v33  ;;  %v3646_v29 = vsub.f32 %v3591_v45, %v202_v6  ;;  %v3649_v30 = vsub.f32 %v3598_v49, %v209_v7  ;;  %v3653_v35 = vsub.f32 %v64_v57, %v112_v5  ;;  %v151_v52 = vand.u32 4294901760, %v3634_v14  ;;  %v3701_v14 = vld [vmem:[#allocation4 + $0x30] sm:$0xff]  ;;  %v3731_v5 = vld [vmem:[#allocation4 + $0x78] sm:$0xff] }
  0x39   :  { %2868 = vmatprep.subr.bf16.mxu1 %v5172_v0  ;;  %2940 = vmatprep.subr.bf16.mxu0 %v5172_v0  ;;  %v3655_v36 = vpack.c.bf16 %v167_v42, %v160_v39  ;;  %v3657_v37 = vpack.c.bf16 %v181_v44, %v174_v43  ;;  %v3659_v38 = vpack.c.bf16 %v195_v48, %v188_v47  ;;  %v223_v43 = vand.u32 4294901760, %v3604_v51  ;;  %v3681_v47 = vld [vmem:[#allocation4] sm:$0xff] }
  0x3a   :  { %v2881_v55 = vpack.c.bf16 %v169_v15, %v162_v11  ;;  %v3664_v56 = vpack.c.bf16 %v183_v17, %v176_v16  ;;  %v3666_v58 = vpack.c.bf16 %v209_v7, %v202_v6  ;;  %v3674_v39 = vpack.c.bf16 %v197_v21, %v190_v20  ;;  %v3683_v48 = vld [vmem:[#allocation4 + $0x20] sm:$0xff]  ;;  %5426 = vst [vmem:[#allocation10_spill] sm:$0xff] %v3701_v14  ;;  %v3711_v21 = vld [vmem:[#allocation4 + $0x48] sm:$0xff] }
  0x3b   :  { %v3677_v42 = vsub.f32 %v3602_v50, %v216_v22  ;;  %v5165_v44 = vand.u32 4294901760, %v3651_v34  ;;  %v204_v57 = vand.u32 4294901760, %v3646_v29  ;;  %v211_v62 = vand.u32 4294901760, %v3649_v30  ;;  %5428 = vst [vmem:[#allocation12_spill] sm:$0xff] %v3711_v21  ;;  %v3713_v29 = vld [vmem:[#allocation4 + $0x68] sm:$0xff]  ;;  %5433 = vst [vmem:[#allocation17_spill] sm:$0xff] %v3731_v5 }
  0x3c   :  { %2870 = vmatpush3.bf16.msra.mxu1 %v3594_v46  ;;  %2942 = vmatpush3.bf16.msra.mxu0 %v3594_v46  ;;  %v5166_v3 = vand.u32 4294901760, %v3661_v40  ;;  %v5169_v7 = vand.u32 4294901760, %v3668_v60  ;;  %v5170_v11 = vand.u32 4294901760, %v3670_v61  ;;  %v5176_v17 = vand.u32 4294901760, %v3681_v47  ;;  %5429 = vst [vmem:[#allocation13_spill] sm:$0xff] %v3713_v29  ;;  %v3751_v15 = vld [vmem:[#allocation4 + $0x60] sm:$0xff] }
  0x3d   :  { %2871 = vmatprep.subr.bf16.mxu1 %v5172_v0  ;;  %2943 = vmatprep.subr.bf16.mxu0 %v5172_v0  ;;  %v3697_v6 = vsub.f32 %v3651_v34, %v5165_v44  ;;  %v5179_v20 = vand.u32 4294901760, %v3683_v48  ;;  %v3736_v30 = vsub.f32 %v3604_v51, %v223_v43  ;;  %5436 = vst [vmem:[#allocation20_spill] sm:$0xff] %v3751_v15  ;;  %v5441_v2 = vand.u32 4294901760, %v3608_v54 }
  0x3e   :  { %v3707_v16 = vsub.f32 %v3661_v40, %v5166_v3  ;;  %v3721_v44 = vsub.f32 %v3668_v60, %v5169_v7  ;;  %v3726_v3 = vsub.f32 %v3670_v61, %v5170_v11  ;;  %v3741_v7 = vsub.f32 %v3681_v47, %v5176_v17 }
  0x3f   :  { %5425 = vst [vmem:[#allocation9_spill] sm:$0xff] %v3697_v6  ;;  %v3746_v11 = vsub.f32 %v3683_v48, %v5179_v20  ;;  %v5440_v20 = vand.u32 4294901760, %v3585_v41  ;;  %v3814_v6 = vld [vmem:[#allocation4 + $0xb8] sm:$0xff]  ;;  %v3816_v41 = vld [vmem:[#allocation4 + $0x80] sm:$0xff] }
  0x40   :  { %2873 = vmatpush3.bf16.msra.mxu1 %v3606_v53  ;;  %2945 = vmatpush3.bf16.msra.mxu0 %v3606_v53  ;;  %5427 = vst [vmem:[#allocation11_spill] sm:$0xff] %v3707_v16  ;;  %5430 = vst [vmem:[#allocation14_spill] sm:$0xff] %v3721_v44  ;;  %v3762_v16 = vld [vmem:[#allocation4 + $0x50] sm:$0xff] }
  0x41   :  { %2874 = vmatprep.subr.bf16.mxu1 %v5172_v0  ;;  %2946 = vmatprep.subr.bf16.mxu0 %v5172_v0  ;;  %5431 = vst [vmem:[#allocation15_spill] sm:$0xff] %v3726_v3  ;;  %5434 = vst [vmem:[#allocation18_spill] sm:$0xff] %v3741_v7  ;;  %v5437_v3 = vand.u32 4294901760, %v3691_v4  ;;  %v3793_v7 = vld [vmem:[#allocation4 + $0x88] sm:$0xff] }
  0x42   :  { %5435 = vst [vmem:[#allocation19_spill] sm:$0xff] %v3746_v11  ;;  %5439 = vst [vmem:[#allocation22_spill] sm:$0xff] %v3762_v16 }
  0x43   :  { %v3758_v44 = vsub.f32 %v3691_v4, %v5437_v3  ;;  %5449 = vst [vmem:[#allocation27_spill] sm:$0xff] %v3793_v7  ;;  %5456 = vst [vmem:[#allocation31_spill] sm:$0xff] %v3814_v6 }
  0x44   :  { %2876 = vmatpush3.bf16.msra.mxu1 %v3625_v8  ;;  %2948 = vmatpush3.bf16.msra.mxu0 %v3625_v8  ;;  %5457 = vst [vmem:[#allocation32_spill] sm:$0xff] %v3816_v41 }
  0x45   :  { %2877 = vmatprep.subr.bf16.mxu1 %v5172_v0  ;;  %2949 = vmatprep.subr.bf16.mxu0 %v5172_v0  ;;  %5438 = vst [vmem:[#allocation21_spill] sm:$0xff] %v3758_v44  ;;  %v3778_v44 = vld [vmem:[#allocation4 + $0x70] sm:$0xff] }
  0x46   :  { %5444 = vst [vmem:[#allocation24_spill] sm:$0xff] %v3778_v44 }
  0x48   :  { %2879 = vmatpush3.bf16.msra.mxu1 %v3643_v23  ;;  %2951 = vmatpush3.bf16.msra.mxu0 %v3643_v23 }
  0x49   :  { %2880 = vmatprep.subr.bf16.mxu1 %v5172_v0  ;;  %2952 = vmatprep.subr.bf16.mxu0 %v5172_v0  ;;  %v3753_v0 = vpack.c.bf16 %v223_v43, %v216_v22  ;;  %v3769_v22 = vsub.f32 %v3608_v54, %v5441_v2  ;;  %v5442_v43 = vand.u32 4294901760, %v3701_v14  ;;  %v5447_v2 = vand.u32 4294901760, %v3713_v29 }
  0x4b   :  { %2679 = vmatmul.mubr.f32.vlgmr.msra.gmra.mrb[0].mxu1 %v151_v52  ;;  %2784 = vmatmul.mubr.f32.vlgmr.msra.gmra.mrb[0].mxu0 %v5440_v20  ;;  %v3774_v3 = vsub.f32 %v3701_v14, %v5442_v43  ;;  %v5445_v52 = vand.u32 4294901760, %v3711_v21  ;;  %v3789_v11 = vsub.f32 %v3713_v29, %v5447_v2  ;;  %v5454_v2 = vand.u32 4294901760, %v3731_v5 }
  0x4c   :  { %2882 = vmatpush3.bf16.msra.mxu1 %v2881_v55  ;;  %2954 = vmatpush3.bf16.msra.mxu0 %v3655_v36  ;;  %v5451_v55 = vmov 0.0|0.0   ;;  %v3799_v36 = vpack.c.bf16 %v211_v62, %v204_v57  ;;  %v5458_v57 = vand.u32 4294901760, %v3617_v63 }
  0x4d   :  { %5443 = vst [vmem:[#allocation23_spill] sm:$0xff] %v3774_v3  ;;  %v3784_v20 = vsub.f32 %v3711_v21, %v5445_v52  ;;  %5448 = vst [vmem:[#allocation26_spill] sm:$0xff] %v3789_v11  ;;  %v3795_v3 = vld [vmem:[#allocation4 + $0xa8] sm:$0xff]  ;;  %2883 = vmatprep.subr.bf16.mxu1 %v5451_v55  ;;  %2955 = vmatprep.subr.bf16.mxu0 %v5451_v55  ;;  %v5452_v52 = vand.u32 4294901760, %v3729_v1  ;;  %v3809_v43 = vsub.f32 %v3731_v5, %v5454_v2  ;;  %v3812_v11 = vld [vmem:[#allocation4 + $0x98] sm:$0xff] }
  0x4e   :  { %5450 = vst [vmem:[#allocation28_spill] sm:$0xff] %v3795_v3  ;;  %v3821_v62 = vsub.f32 %v3617_v63, %v5458_v57  ;;  %v5460_v2 = vand.u32 4294901760, %v3749_v59  ;;  %v5197_v5 = vand.u32 4294901760, %v3778_v44  ;;  %v3838_v57 = vld [vmem:[#allocation4 + $0xa0] sm:$0xff]  ;;  %v5466_v21 = vand.u32 4294901760, %v3762_v16 }
  0x4f   :  { %5446 = vst [vmem:[#allocation25_spill] sm:$0xff] %v3784_v20  ;;  %v3804_v20 = vsub.f32 %v3729_v1, %v5452_v52  ;;  %5455 = vst [vmem:[#allocation30_spill] sm:$0xff] %v3809_v43  ;;  %v5459_v52 = vmov 0.0   ;;  %v5462_v43 = vand.u32 4294901760, %v3751_v15  ;;  %v5465_v1 = vand.u32 4294901760, %v3627_v9 }
  0x50   :  { %2713 = vmatprep.mubr.msk.f32.mxu1 %vm3483_vm0, %v5459_v52  ;;  %2818 = vmatprep.mubr.msk.f32.mxu0 %vm3483_vm0, %v5459_v52  ;;  %v3830_v17 = vsub.f32 %v3749_v59, %v5460_v2  ;;  %5464 = vst [vmem:[#allocation35_spill] sm:$0xff] %v3838_v57  ;;  %v3848_v14 = vsub.f32 %v3762_v16, %v5466_v21  ;;  %v3864_v2 = vld [vmem:[#allocation4 + $0xb0] sm:$0xff]  ;;  %v5474_v16 = vand.u32 4294901760, %v3812_v11  ;;  %v5478_v21 = vand.u32 4294901760, %v3816_v41 }
  0x51   :  { %5453 = vst [vmem:[#allocation29_spill] sm:$0xff] %v3804_v20  ;;  %v3835_v20 = vsub.f32 %v3751_v15, %v5462_v43  ;;  %v3843_v29 = vsub.f32 %v3627_v9, %v5465_v1  ;;  %2885 = vmatpush3.bf16.msra.mxu1 %v3664_v56  ;;  %2957 = vmatpush3.bf16.msra.mxu0 %v3657_v37  ;;  %5470 = vst [vmem:[#allocation39_spill] sm:$0xff] %v3864_v2  ;;  %v225_v37 = vand.u32 4294901760, %v3736_v30  ;;  %v3880_v1 = vld [vmem:[#allocation4 + $0xc8] sm:$0xff] }
  0x52   :  { %5461 = vst [vmem:[#allocation33_spill] sm:$0xff] %v3830_v17  ;;  %5467 = vst [vmem:[#allocation36_spill] sm:$0xff] %v3848_v14  ;;  %v5202_v17 = vand.u32 4294901760, %v3795_v3  ;;  %v3857_v43 = vsub.f32 %v3778_v44, %v5197_v5  ;;  %v3862_v14 = vld [vmem:[#allocation4 + $0x90] sm:$0xff]  ;;  %2886 = vmatprep.subr.bf16.mxu1 %v5451_v55  ;;  %2958 = vmatprep.subr.bf16.mxu0 %v5451_v55  ;;  %v5471_v56 = vand.u32 4294901760, %v3793_v7  ;;  %v3884_v44 = vld [vmem:[#allocation4 + $0xd8] sm:$0xff] }
  0x53   :  { %5463 = vst [vmem:[#allocation34_spill] sm:$0xff] %v3835_v20  ;;  %5469 = vst [vmem:[#allocation38_spill] sm:$0xff] %v3862_v14  ;;  %v232_v30 = vand.u32 4294901760, %v3769_v22  ;;  %v251_v22 = vand.u32 4294901760, %v3629_v10  ;;  %v5480_v15 = vand.u32 4294901760, %v3838_v57 }
  0x54   :  { %5468 = vst [vmem:[#allocation37_spill] sm:$0xff] %v3857_v43  ;;  %v3872_v5 = vsub.f32 %v3793_v7, %v5471_v56  ;;  %v3877_v20 = vsub.f32 %v3795_v3, %v5202_v17  ;;  %v3882_v43 = vld [vmem:[#allocation4 + $0xe8] sm:$0xff]  ;;  %v3890_v56 = vsub.f32 %v3812_v11, %v5474_v16  ;;  %v3902_v3 = vld [vmem:[#allocation4 + $0xf8] sm:$0xff]  ;;  %v3904_v7 = vld [vmem:[#allocation4 + $0xc0] sm:$0xff] }
  0x55   :  { %v3910_v16 = vsub.f32 %v3838_v57, %v5480_v15  ;;  %2888 = vmatpush3.bf16.msra.mxu1 %v3674_v39  ;;  %2960 = vmatpush3.bf16.msra.mxu0 %v3659_v38  ;;  %v265_v57 = vand.u32 4294901760, %v3653_v35 }
  0x56   :  { %5472 = vst [vmem:[#allocation40_spill] sm:$0xff] %v3872_v5  ;;  %5473 = vst [vmem:[#allocation41_spill] sm:$0xff] %v3877_v20  ;;  %v5476_v5 = vand.u32 4294901760, %v3814_v6  ;;  %v3900_v20 = vsub.f32 %v3816_v41, %v5478_v21  ;;  %v258_v21 = vand.u32 4294901760, %v3638_v19  ;;  %2889 = vmatprep.subr.bf16.mxu1 %v5451_v55  ;;  %2961 = vmatprep.subr.bf16.mxu0 %v5451_v55  ;;  %v5488_v41 = vand.u32 4294901760, %v3884_v44 }
  0x57   :  { %5475 = vst [vmem:[#allocation42_spill] sm:$0xff] %v3890_v56  ;;  %5481 = vst [vmem:[#allocation45_spill] sm:$0xff] %v3910_v16  ;;  %v5214_v56 = vand.u32 4294901760, %v3862_v14  ;;  %v239_v16 = vand.u32 4294901760, %v3821_v62 }
  0x58   :  { %v3895_v17 = vsub.f32 %v3814_v6, %v5476_v5  ;;  %5479 = vst [vmem:[#allocation44_spill] sm:$0xff] %v3900_v20  ;;  %v5216_v5 = vand.u32 4294901760, %v3864_v2  ;;  %v3920_v6 = vld [vmem:[#allocation4 + $0xe0] sm:$0xff]  ;;  %v3938_v20 = vld [vmem:[#allocation4 + $0xf0] sm:$0xff]  ;;  %v3955_v15 = vsub.f32 %v3884_v44, %v5488_v41 }
  0x59   :  { %v3927_v39 = vsub.f32 %v3862_v14, %v5214_v56  ;;  %v5484_v56 = vand.u32 4294901760, %v3880_v1  ;;  %v5224_v14 = vand.u32 4294901760, %v3920_v6  ;;  %2891 = vmatpush3.bf16.msra.mxu1 %v3799_v36  ;;  %2963 = vmatpush3.bf16.msra.mxu0 %v3666_v58  ;;  %v5496_v36 = vand.u32 4294901760, %v3608_v54 }
  0x5a   :  { %5477 = vst [vmem:[#allocation43_spill] sm:$0xff] %v3895_v17  ;;  %v3932_v38 = vsub.f32 %v3864_v2, %v5216_v5  ;;  %v3936_v17 = vld [vmem:[#allocation4 + $0xd0] sm:$0xff]  ;;  %v5486_v5 = vand.u32 4294901760, %v3882_v43  ;;  %5489 = vst [vmem:[#allocation50_spill] sm:$0xff] %v3955_v15  ;;  %v5490_v2 = vand.u32 4294901760, %v3902_v3  ;;  %v252_v15 = vsub.f32 %v3629_v10, %v251_v22  ;;  %2892 = vmatprep.subr.bf16.mxu1 %v5451_v55 }
  0x5b   :  { %5482 = vst [vmem:[#allocation46_spill] sm:$0xff] %v3927_v39  ;;  %v3945_v39 = vsub.f32 %v3880_v1, %v5484_v56  ;;  %v5491_v56 = vand.u32 4294901760, %v3904_v7  ;;  %2964 = vmatprep.subr.bf16.mxu0 %v5451_v55 }
  0x5c   :  { %5483 = vst [vmem:[#allocation47_spill] sm:$0xff] %v3932_v38  ;;  %v3950_v38 = vsub.f32 %v3882_v43, %v5486_v5  ;;  %v3960_v62 = vsub.f32 %v3902_v3, %v5490_v2  ;;  %v5493_v5 = vand.u32 4294901760, %v3677_v42  ;;  %v5228_v2 = vand.u32 4294901760, %v3938_v20 }
  0x5d   :  { %5485 = vst [vmem:[#allocation48_spill] sm:$0xff] %v3945_v39  ;;  %v3966_v39 = vsub.f32 %v3904_v7, %v5491_v56  ;;  %v3980_v56 = vsub.f32 %v3920_v6, %v5224_v14  ;;  %2966 = vmatpush3.bf16.msra.mxu0 %v3753_v0  ;;  %v2896_v14 = vpack.c.bf16 %v239_v16, %v232_v30 }
  0x5e   :  { %5487 = vst [vmem:[#allocation49_spill] sm:$0xff] %v3950_v38  ;;  %v2893_v41 = vpack.c.bf16 %v225_v37, %v5493_v5  ;;  %v5226_v38 = vand.u32 4294901760, %v3936_v17  ;;  %v3990_v42 = vsub.f32 %v3938_v20, %v5228_v2  ;;  %v5497_v37 = vand.u32 4294901760, %v3617_v63  ;;  %2967 = vmatprep.subr.bf16.mxu0 %v5451_v55 }
  0x5f   :  { %5492 = vst [vmem:[#allocation51_spill] sm:$0xff] %v3966_v39  ;;  %5494 = vst [vmem:[#allocation52_spill] sm:$0xff] %v3980_v56  ;;  %v246_v39 = vand.u32 4294901760, %v3843_v29  ;;  %v253_v56 = vand.u32 4294901760, %v252_v15  ;;  %v2974_v30 = vpack.c.bf16 %v265_v57, %v258_v21 }
  0x60   :  { %v3985_v58 = vsub.f32 %v3936_v17, %v5226_v38  ;;  %v2968_v5 = vpack.c.bf16 %v5497_v37, %v5496_v36  ;;  %2894 = vmatpush3.bf16.msra.mxu1 %v2893_v41  ;;  %v259_v38 = vsub.f32 %v3638_v19, %v258_v21  ;;  %v5498_v36 = vand.u32 4294901760, %v3627_v9  ;;  %v5527_v21 = vld [vmem:[#allocation22_spill] sm:$0xff] }
  0x61   :  { %2895 = vmatprep.subr.bf16.mxu1 %v5451_v55  ;;  %v2899_v2 = vpack.c.bf16 %v253_v56, %v246_v39  ;;  %v5528_v39 = vand.u32 4294901760, %v5527_v21 }
  0x62   :  { %5495 = vst [vmem:[#allocation53_spill] sm:$0xff] %v3985_v58  ;;  %v266_v58 = vsub.f32 %v3653_v35, %v265_v57  ;;  %2969 = vmatpush3.bf16.msra.mxu0 %v2968_v5  ;;  %v2971_v37 = vpack.c.bf16 %v251_v22, %v5498_v36  ;;  %v260_v29 = vand.u32 4294901760, %v259_v38  ;;  %v2908_v57 = vpack.c.bf16 %v3569_v27, %v3567_v26  ;;  %v5529_v38 = vld [vmem:[#allocation24_spill] sm:$0xff] }
  0x63   :  { %2970 = vmatprep.subr.bf16.mxu0 %v5451_v55  ;;  %v2926_v26 = vpack.c.bf16 %v3653_v35, %v3638_v19  ;;  %v5499_v27 = vand.u32 4294901760, %v3651_v34  ;;  %v5514_v19 = vld [vmem:[#allocation13_spill] sm:$0xff]  ;;  %v5517_v35 = vld [vmem:[#allocation16_spill] sm:$0xff]  ;;  %v5530_v15 = vand.u32 4294901760, %v5529_v38 }
  0x64   :  { %2897 = vmatpush3.bf16.msra.mxu1 %v2896_v14  ;;  %v267_v41 = vand.u32 4294901760, %v266_v58  ;;  %v2905_v14 = vpack.c.bf16 %v3565_v25, %v3563_v24  ;;  %v2911_v24 = vpack.c.bf16 %v3576_v32, %v3571_v28  ;;  %v2923_v25 = vpack.c.bf16 %v3629_v10, %v3627_v9  ;;  %v5512_v9 = vld [vmem:[#allocation12_spill] sm:$0xff]  ;;  %v4214_v38 = vld [vmem:[#allocation4 + $0x168] sm:$0xff] }
  0x65   :  { %2898 = vmatprep.subr.bf16.mxu1 %v5451_v55  ;;  %v5500_v28 = vand.u32 4294901760, %v3661_v40  ;;  %v5513_v10 = vand.u32 4294901760, %v5512_v9  ;;  %v5518_v40 = vand.u32 4294901760, %v5517_v35  ;;  %v5534_v58 = vld [vmem:[#allocation28_spill] sm:$0xff] }
  0x66   :  { %2972 = vmatpush3.bf16.msra.mxu0 %v2971_v37  ;;  %v2902_v0 = vpack.c.bf16 %v267_v41, %v260_v29  ;;  %v5535_v5 = vand.u32 4294901760, %v5534_v58  ;;  %v5538_v37 = vld [vmem:[#allocation31_spill] sm:$0xff]  ;;  %v5233_v58 = vand.u32 4294901760, %v4214_v38 }
  0x67   :  { %2973 = vmatprep.subr.bf16.mxu0 %v5451_v55  ;;  %v4057_v32 = vpack.c.bf16 %v5500_v28, %v5499_v27  ;;  %v5539_v29 = vand.u32 4294901760, %v5538_v37  ;;  %v5552_v27 = vand.u32 4294901760, %v3882_v43  ;;  %v5560_v43 = vand.u32 4294901760, %v3936_v17  ;;  %v4230_v37 = vld [vmem:[#allocation4 + $0x140] sm:$0xff] }
  0x68   :  { %2900 = vmatpush3.bf16.msra.mxu1 %v2899_v2  ;;  %v4106_v2 = vpack.c.bf16 %v5530_v15, %v5528_v39  ;;  %v4212_v39 = vld [vmem:[#allocation4 + $0x148] sm:$0xff]  ;;  %v4216_v15 = vld [vmem:[#allocation4 + $0x158] sm:$0xff] }
  0x69   :  { %2901 = vmatprep.subr.bf16.mxu1 %v5451_v55  ;;  %5501 = vst [vmem:[#allocation54_spill] sm:$0xff] %v4057_v32 }
  0x6a   :  { %2975 = vmatpush3.bf16.msra.mxu0 %v2974_v30 }
  0x6b   :  { %2976 = vmatprep.subr.bf16.mxu0 %v5451_v55 }
  0x6c   :  { %2903 = vmatpush3.bf16.msra.mxu1 %v2902_v0  ;;  %v5541_v0 = vld [vmem:[#allocation32_spill] sm:$0xff] }
  0x6d   :  { %2904 = vmatprep.subr.bf16.mxu1 %v5451_v55  ;;  %2819 = vmatmul.mubr.f32.vlgmr.msra.gmra.mrb[0].mxu0 %v3573_v31  ;;  %v5542_v30 = vand.u32 4294901760, %v5541_v0 }
  0x6e   :  { %2978 = vmatpush3.bf16.msra.mxu0 %v3546_v12  ;;  %2853 = vmatprep.mubr.msk.f32.mxu0 %vm3483_vm0, %v5459_v52  ;;  %v2914_v12 = vpack.c.bf16 %v3598_v49, %v3591_v45  ;;  %v5503_v45 = vand.u32 4294901760, %v3670_v61  ;;  %v5505_v49 = vand.u32 4294901760, %v3681_v47 }
  0x6f   :  { %2714 = vmatmul.mubr.f32.vlgmr.msra.gmra.mrb[0].mxu1 %v3573_v31  ;;  %2979 = vmatprep.subr.bf16.mxu0 %v5451_v55 }
  0x70   :  { %2906 = vmatpush3.bf16.msra.mxu1 %v2905_v14  ;;  %2748 = vmatprep.mubr.msk.f32.mxu1 %vm3483_vm0, %v5459_v52  ;;  %v5543_v14 = vld [vmem:[#allocation35_spill] sm:$0xff] }
  0x71   :  { %2907 = vmatprep.subr.bf16.mxu1 %v5451_v55 }
  0x72   :  { %2981 = vmatpush3.bf16.msra.mxu0 %v3550_v13  ;;  %v2917_v13 = vpack.c.bf16 %v3604_v51, %v3602_v50  ;;  %v5506_v50 = vand.u32 4294901760, %v3683_v48  ;;  %v5522_v48 = vld [vmem:[#allocation8_spill] sm:$0xff] }
  0x73   :  { %2982 = vmatprep.subr.bf16.mxu0 %v5451_v55 }
  0x74   :  { %2909 = vmatpush3.bf16.msra.mxu1 %v2908_v57  ;;  %v4070_v51 = vpack.c.bf16 %v5506_v50, %v5505_v49  ;;  %v5544_v57 = vand.u32 4294901760, %v5543_v14  ;;  %v5557_v50 = vand.u32 4294901760, %v3904_v7  ;;  %v4172_v7 = vld [vmem:[#allocation4 + $0x128] sm:$0xff] }
  0x75   :  { %2910 = vmatprep.subr.bf16.mxu1 %v5451_v55 }
  0x76   :  { %2984 = vmatpush3.bf16.msra.mxu0 %v3556_v18  ;;  %v2920_v18 = vpack.c.bf16 %v3617_v63, %v3608_v54  ;;  %5507 = vst [vmem:[#allocation56_spill] sm:$0xff] %v4070_v51  ;;  %v5509_v54 = vld [vmem:[#allocation10_spill] sm:$0xff] }
  0x77   :  { %2985 = vmatprep.subr.bf16.mxu0 %v5451_v55  ;;  %v5510_v63 = vand.u32 4294901760, %v5509_v54 }
  0x78   :  { %2912 = vmatpush3.bf16.msra.mxu1 %v2911_v24  ;;  %v4130_v24 = vpack.c.bf16 %v5544_v57, %v5542_v30  ;;  %v5230_v30 = vand.u32 4294901760, %v4230_v37  ;;  %v4239_v57 = vld [vmem:[#allocation4 + $0x150] sm:$0xff] }
  0x79   :  { %2913 = vmatprep.subr.bf16.mxu1 %v5451_v55 }
  0x7a   :  { %2987 = vmatpush3.bf16.msra.mxu0 %v3579_v33  ;;  %v5502_v33 = vand.u32 4294901760, %v3668_v60  ;;  %v5519_v60 = vld [vmem:[#allocation17_spill] sm:$0xff]  ;;  %5545 = vst [vmem:[#allocation22_spill] sm:$0xff] %v4130_v24 }
  0x7b   :  { %2988 = vmatprep.subr.bf16.mxu0 %v5451_v55  ;;  %v5520_v61 = vand.u32 4294901760, %v5519_v60  ;;  %5531 = vst [vmem:[#allocation17_spill] sm:$0xff] %v4106_v2  ;;  %v4188_v60 = vld [vmem:[#allocation4 + $0x110] sm:$0xff] }
  0x7c   :  { %2915 = vmatpush3.bf16.msra.mxu1 %v2914_v12  ;;  %v5546_v12 = vld [vmem:[#allocation38_spill] sm:$0xff] }
  0x7d   :  { %2916 = vmatprep.subr.bf16.mxu1 %v5451_v55  ;;  %v4090_v47 = vpack.c.bf16 %v5520_v61, %v5518_v40  ;;  %v4190_v61 = vld [vmem:[#allocation4 + $0x130] sm:$0xff] }
  0x7e   :  { %2990 = vmatpush3.bf16.msra.mxu0 %v3594_v46  ;;  %v4063_v46 = vpack.c.bf16 %v5503_v45, %v5502_v33  ;;  %v5554_v33 = vand.u32 4294901760, %v3884_v44  ;;  %v5555_v45 = vand.u32 4294901760, %v3902_v3  ;;  %v4170_v44 = vld [vmem:[#allocation4 + $0x108] sm:$0xff]  ;;  %v5243_v3 = vand.u32 4294901760, %v4172_v7 }
  0x7f   :  { %2991 = vmatprep.subr.bf16.mxu0 %v5451_v55  ;;  %5521 = vst [vmem:[#allocation13_spill] sm:$0xff] %v4090_v47  ;;  %v5244_v17 = vand.u32 4294901760, %v4170_v44 }
  0x80   :  { %2918 = vmatpush3.bf16.msra.mxu1 %v2917_v13  ;;  %5504 = vst [vmem:[#allocation55_spill] sm:$0xff] %v4063_v46  ;;  %v5548_v13 = vld [vmem:[#allocation39_spill] sm:$0xff]  ;;  %v4150_v49 = vpack.c.bf16 %v5555_v45, %v5554_v33  ;;  %v4264_v33 = vld [vmem:[#allocation4 + $0x188] sm:$0xff] }
  0x81   :  { %2919 = vmatprep.subr.bf16.mxu1 %v5451_v55  ;;  %v4266_v45 = vld [vmem:[#allocation4 + $0x1a8] sm:$0xff] }
  0x82   :  { %2993 = vmatpush3.bf16.msra.mxu0 %v3606_v53  ;;  %v5508_v53 = vand.u32 4294901760, %v3691_v4  ;;  %v5523_v4 = vand.u32 4294901760, %v3749_v59  ;;  %v5537_v59 = vand.u32 4294901760, %v3812_v11  ;;  %v5547_v11 = vand.u32 4294901760, %v5546_v12  ;;  %5556 = vst [vmem:[#allocation28_spill] sm:$0xff] %v4150_v49  ;;  %v4241_v12 = vld [vmem:[#allocation4 + $0x170] sm:$0xff] }
  0x83   :  { %2994 = vmatprep.subr.bf16.mxu0 %v5451_v55 }
  0x84   :  { %2921 = vmatpush3.bf16.msra.mxu1 %v2920_v18  ;;  %v4120_v41 = vpack.c.bf16 %v5539_v29, %v5537_v59  ;;  %v5549_v18 = vand.u32 4294901760, %v5548_v13  ;;  %v5232_v59 = vand.u32 4294901760, %v4216_v15  ;;  %v4232_v29 = vld [vmem:[#allocation4 + $0x160] sm:$0xff]  ;;  %v5239_v13 = vand.u32 4294901760, %v4239_v57 }
  0x85   :  { %2922 = vmatprep.subr.bf16.mxu1 %v5451_v55  ;;  %v5229_v14 = vand.u32 4294901760, %v4232_v29 }
  0x86   :  { %2996 = vmatpush3.bf16.msra.mxu0 %v3625_v8  ;;  %v4076_v8 = vpack.c.bf16 %v5510_v63, %v5508_v53  ;;  %v5558_v53 = vand.u32 4294901760, %v3920_v6  ;;  %v4174_v6 = vld [vmem:[#allocation4 + $0x118] sm:$0xff] }
  0x87   :  { %2997 = vmatprep.subr.bf16.mxu0 %v5451_v55  ;;  %v5242_v9 = vand.u32 4294901760, %v4174_v6 }
  0x88   :  { %2924 = vmatpush3.bf16.msra.mxu1 %v2923_v25  ;;  %5511 = vst [vmem:[#allocation10_spill] sm:$0xff] %v4076_v8  ;;  %v4136_v25 = vpack.c.bf16 %v5549_v18, %v5547_v11  ;;  %v4158_v54 = vpack.c.bf16 %v5558_v53, %v5557_v50  ;;  %v5238_v18 = vand.u32 4294901760, %v4241_v12  ;;  %v4268_v50 = vld [vmem:[#allocation4 + $0x198] sm:$0xff] }
  0x89   :  { %2925 = vmatprep.subr.bf16.mxu1 %v5451_v55  ;;  %v5524_v55 = vld [vmem:[#allocation20_spill] sm:$0xff] }
  0x8a   :  { %2999 = vmatpush3.bf16.msra.mxu0 %v3643_v23  ;;  %v5515_v23 = vand.u32 4294901760, %v5514_v19  ;;  %v5525_v22 = vand.u32 4294901760, %v5524_v55  ;;  %5540 = vst [vmem:[#allocation20_spill] sm:$0xff] %v4120_v41  ;;  %5550 = vst [vmem:[#allocation24_spill] sm:$0xff] %v4136_v25  ;;  %v4183_v19 = vld [vmem:[#allocation4 + $0x120] sm:$0xff]  ;;  %v5235_v55 = vand.u32 4294901760, %v4190_v61  ;;  %v4275_v53 = vpack.c.bf16 %v5238_v18, %v5239_v13 }
  0x8b   :  { %3193 = vmatprep.subr.bf16.mxu0 %v4063_v46  ;;  %5559 = vst [vmem:[#allocation31_spill] sm:$0xff] %v4158_v54  ;;  %v5237_v40 = vand.u32 4294901760, %v4183_v19 }
  0x8c   :  { %2927 = vmatpush3.bf16.msra.mxu1 %v2926_v26  ;;  %v4084_v34 = vpack.c.bf16 %v5515_v23, %v5513_v10  ;;  %v4100_v16 = vpack.c.bf16 %v5525_v22, %v5523_v4  ;;  %v5551_v26 = vand.u32 4294901760, %v3880_v1  ;;  %v5561_v1 = vand.u32 4294901760, %v3938_v20  ;;  %v4178_v20 = vld [vmem:[#allocation4 + $0x138] sm:$0xff]  ;;  %v4181_v10 = vld [vmem:[#allocation4 + $0x100] sm:$0xff]  ;;  %5570 = vst [vmem:[#allocation61_spill] sm:$0xff] %v4275_v53 }
  0x8d   :  { %3001 = vmatprep.subr.bf16.mxu1 %v4057_v32  ;;  %2854 = vmatmul.mubr.f32.vlgmr.msra.gmra.mrb[0].mxu0 %v3573_v31  ;;  %v5532_v31 = vld [vmem:[#allocation27_spill] sm:$0xff]  ;;  %v5241_v23 = vand.u32 4294901760, %v4178_v20  ;;  %v5240_v35 = vand.u32 4294901760, %v4181_v10  ;;  %v5236_v4 = vand.u32 4294901760, %v4188_v60 }
  0x8e   :  { %5516 = vst [vmem:[#allocation12_spill] sm:$0xff] %v4084_v34  ;;  %3195 = vmatpush1.bf16.msra.mxu0 %v4076_v8  ;;  %5526 = vst [vmem:[#allocation16_spill] sm:$0xff] %v4100_v16  ;;  %v5533_v56 = vand.u32 4294901760, %v5532_v31  ;;  %1745 = vmatprep.mubr.f32.mxu0 %v5459_v52  ;;  %v4144_v28 = vpack.c.bf16 %v5552_v27, %v5551_v26  ;;  %v4164_v63 = vpack.c.bf16 %v5561_v1, %v5560_v43 }
  0x8f   :  { %2749 = vmatmul.mubr.f32.vlgmr.msra.gmra.mrb[0].mxu1 %v5522_v48  ;;  %3197 = vmatprep.subr.bf16.mxu0 %v4090_v47  ;;  %v4196_v48 = vpack.c.bf16 %v5243_v3, %v5244_v17  ;;  %v4204_v22 = vpack.c.bf16 %v5241_v23, %v5242_v9  ;;  %v4210_v21 = vpack.c.bf16 %v5237_v40, %v5240_v35  ;;  %v842_v43 = vand.u32 4294901760, %v4264_v33  ;;  %v762_v40 = vld [vmem:[#allocation4 + $0x1b0] sm:$0xff]  ;;  %v765_v3 = vld [vmem:[#allocation4 + $0x1c8] sm:$0xff] }
  0x90   :  { %3003 = vmatpush1.bf16.msra.mxu1 %v4070_v51  ;;  %v4114_v36 = vpack.c.bf16 %v5535_v5, %v5533_v56  ;;  %890 = vmatprep.mubr.f32.mxu1 %v5459_v52  ;;  %5553 = vst [vmem:[#allocation27_spill] sm:$0xff] %v4144_v28  ;;  %5562 = vst [vmem:[#allocation32_spill] sm:$0xff] %v4164_v63  ;;  %v4223_v31 = vpack.c.bf16 %v5235_v55, %v5236_v4  ;;  %v5234_v56 = vand.u32 4294901760, %v4212_v39  ;;  %v4227_v5 = vld [vmem:[#allocation4 + $0x178] sm:$0xff]  ;;  %v758_v4 = vld [vmem:[#allocation4 + $0x190] sm:$0xff] }
  0x91   :  { %3005 = vmatprep.subr.bf16.mxu1 %v4084_v34  ;;  %5563 = vst [vmem:[#allocation35_spill] sm:$0xff] %v4196_v48  ;;  %5564 = vst [vmem:[#allocation38_spill] sm:$0xff] %v4204_v22  ;;  %v5231_v0 = vand.u32 4294901760, %v4227_v5  ;;  %v4262_v27 = vpack.c.bf16 %v5229_v14, %v5230_v30  ;;  %v846_v1 = vand.u32 4294901760, %v4266_v45  ;;  %v763_v14 = vld [vmem:[#allocation4 + $0x1b8] sm:$0xff]  ;;  %v1697_v30 = vand.u32 4294901760, %v4268_v50 }
  0x92   :  { %5536 = vst [vmem:[#allocation8_spill] sm:$0xff] %v4114_v36  ;;  %3199 = vmatpush1.bf16.msra.mxu0 %v4106_v2  ;;  %5565 = vst [vmem:[#allocation39_spill] sm:$0xff] %v4210_v21  ;;  %v4248_v11 = vpack.c.bf16 %v5233_v58, %v5234_v56  ;;  %v1701_v58 = vand.u32 4294901760, %v763_v14  ;;  %v1699_v13 = vand.u32 4294901760, %v758_v4  ;;  %v1703_v35 = vand.u32 4294901760, %v762_v40  ;;  %v769_v17 = vld [vmem:[#allocation4 + $0x1e8] sm:$0xff] }
  0x93   :  { %3201 = vmatprep.subr.bf16.mxu0 %v4120_v41  ;;  %5566 = vst [vmem:[#allocation57_spill] sm:$0xff] %v4223_v31  ;;  %v4256_v26 = vpack.c.bf16 %v5231_v0, %v5232_v59  ;;  %5569 = vst [vmem:[#allocation60_spill] sm:$0xff] %v4262_v27  ;;  %v756_v0 = vld [vmem:[#allocation4 + $0x180] sm:$0xff]  ;;  %v4283_v18 = vpack.c.bf16 %v846_v1, %v842_v43  ;;  %v5578_v34 = vand.u32 4294901760, %v4170_v44  ;;  %v5580_v41 = vand.u32 4294901760, %v4174_v6 }
  0x94   :  { %3007 = vmatpush1.bf16.msra.mxu1 %v4100_v16  ;;  %5567 = vst [vmem:[#allocation58_spill] sm:$0xff] %v4248_v11  ;;  %v760_v59 = vld [vmem:[#allocation4 + $0x1a0] sm:$0xff]  ;;  %v844_v56 = vand.u32 4294901760, %v756_v0  ;;  %v4285_v23 = vpack.c.bf16 %v1701_v58, %v1697_v30  ;;  %v5577_v16 = vld [vmem:[#allocation11_spill] sm:$0xff]  ;;  %v5581_v51 = vand.u32 4294901760, %v4178_v20  ;;  %v5582_v47 = vand.u32 4294901760, %v4181_v10 }
  0x95   :  { %3009 = vmatprep.subr.bf16.mxu1 %v4114_v36  ;;  %5568 = vst [vmem:[#allocation59_spill] sm:$0xff] %v4256_v26  ;;  %v848_v55 = vand.u32 4294901760, %v760_v59  ;;  %5571 = vst [vmem:[#allocation62_spill] sm:$0xff] %v4283_v18 }
  0x96   :  { %3203 = vmatpush1.bf16.msra.mxu0 %v4136_v25  ;;  %5572 = vst [vmem:[#allocation63_spill] sm:$0xff] %v4285_v23  ;;  %v770_v25 = vld [vmem:[#allocation4 + $0x1f0] sm:$0xff]  ;;  %v4317_v46 = vsub.f32 %v4178_v20, %v5581_v51 }
  0x97   :  { %3205 = vmatprep.subr.bf16.mxu0 %v4150_v49  ;;  %v4287_v9 = vpack.c.bf16 %v848_v55, %v844_v56  ;;  %v1711_v2 = vand.u32 4294901760, %v770_v25 }
  0x98   :  { %3011 = vmatpush1.bf16.msra.mxu1 %v4130_v24  ;;  %v5575_v24 = vld [vmem:[#allocation9_spill] sm:$0xff] }
  0x99   :  { %3013 = vmatprep.subr.bf16.mxu1 %v4144_v28  ;;  %5573 = vst [vmem:[#allocation64_spill] sm:$0xff] %v4287_v9  ;;  %v766_v28 = vld [vmem:[#allocation4 + $0x1d0] sm:$0xff] }
  0x9a   :  { %3207 = vmatpush1.bf16.msra.mxu0 %v4164_v63  ;;  %v1707_v36 = vand.u32 4294901760, %v766_v28 }
  0x9b   :  { %3209 = vmatprep.subr.bf16.mxu0 %v4204_v22 }
  0x9c   :  { %3015 = vmatpush1.bf16.msra.mxu1 %v4158_v54 }
  0x9d   :  { %3017 = vmatprep.subr.bf16.mxu1 %v4196_v48  ;;  %v768_v48 = vld [vmem:[#allocation4 + $0x1e0] sm:$0xff] }
  0x9e   :  { %3211 = vmatpush1.bf16.msra.mxu0 %v4223_v31  ;;  %v854_v31 = vand.u32 4294901760, %v769_v17  ;;  %v856_v49 = vand.u32 4294901760, %v768_v48 }
  0x9f   :  { %3213 = vmatprep.subr.bf16.mxu0 %v4256_v26  ;;  %v767_v26 = vld [vmem:[#allocation4 + $0x1d8] sm:$0xff] }
  0xa0   :  { %3019 = vmatpush1.bf16.msra.mxu1 %v4210_v21  ;;  %v771_v21 = vld [vmem:[#allocation4 + $0x1f8] sm:$0xff]  ;;  %v1705_v22 = vand.u32 4294901760, %v767_v26 }
  0xa1   :  { %3021 = vmatprep.subr.bf16.mxu1 %v4248_v11  ;;  %v850_v11 = vand.u32 4294901760, %v765_v3  ;;  %v1709_v63 = vand.u32 4294901760, %v771_v21 }
  0xa2   :  { %3215 = vmatpush1.bf16.msra.mxu0 %v4275_v53  ;;  %v764_v53 = vld [vmem:[#allocation4 + $0x1c0] sm:$0xff] }
  0xa3   :  { %3217 = vmatprep.subr.bf16.mxu0 %v4285_v23  ;;  %v852_v54 = vand.u32 4294901760, %v764_v53  ;;  %v4302_v23 = vsub.f32 %v4170_v44, %v5578_v34  ;;  %v4322_v34 = vsub.f32 %v4181_v10, %v5582_v47  ;;  %v5583_v44 = vand.u32 4294901760, %v4183_v19 }
  0xa4   :  { %3023 = vmatpush1.bf16.msra.mxu1 %v4262_v27  ;;  %v4290_v27 = vpack.c.bf16 %v1703_v35, %v1699_v13  ;;  %v5587_v47 = vand.u32 4294901760, %v4212_v39  ;;  %v5588_v10 = vand.u32 4294901760, %v4214_v38 }
  0xa5   :  { %3025 = vmatprep.subr.bf16.mxu1 %v4283_v18  ;;  %v4296_v18 = vpack.c.bf16 %v854_v31, %v850_v11 }
  0xa6   :  { %5574 = vst [vmem:[#allocation65_spill] sm:$0xff] %v4290_v27  ;;  %3219 = vmatpush1.bf16.msra.mxu0 %v4290_v27  ;;  %v4312_v27 = vsub.f32 %v4174_v6, %v5580_v41  ;;  %v5585_v6 = vand.u32 4294901760, %v4190_v61  ;;  %v4343_v20 = vsub.f32 %v4212_v39, %v5587_v47  ;;  %v5595_v47 = vand.u32 4294901760, %v4232_v29 }
  0xa7   :  { %5576 = vst [vmem:[#allocation66_spill] sm:$0xff] %v4296_v18 }
  0xa8   :  { %3027 = vmatpush1.bf16.msra.mxu1 %v4287_v9  ;;  %v5579_v9 = vand.u32 4294901760, %v4172_v7  ;;  %v4337_v51 = vsub.f32 %v4190_v61, %v5585_v6  ;;  %v5592_v61 = vand.u32 4294901760, %v4227_v5  ;;  %v5594_v6 = vand.u32 4294901760, %v4230_v37 }
  0xa9   :  { %3029 = vmatprep.subr.bf16.mxu1 %v4296_v18  ;;  %v4397_v18 = vsub.f32 %v762_v40, %v1703_v35  ;;  %v4416_v35 = vpack.c.bf16 %v1711_v2, %v1707_v36  ;;  %v5614_v40 = vand.u32 4294901760, %v5575_v24 }
  0xaa   :  { %v4307_v8 = vsub.f32 %v4172_v7, %v5579_v9  ;;  %v4327_v7 = vsub.f32 %v4183_v19, %v5583_v44  ;;  %v5584_v9 = vand.u32 4294901760, %v4188_v60  ;;  %5586 = vst [vmem:[#allocation67_spill] sm:$0xff] %v4337_v51  ;;  %v4348_v19 = vsub.f32 %v4214_v38, %v5588_v10 }
  0xab   :  { %v4363_v39 = vsub.f32 %v4230_v37, %v5594_v6  ;;  %v4368_v38 = vsub.f32 %v4232_v29, %v5595_v47  ;;  %v5597_v10 = vand.u32 4294901760, %v4239_v57  ;;  %v4384_v37 = vsub.f32 %v4266_v45, %v846_v1  ;;  %5605 = vst [vmem:[#allocation78_spill] sm:$0xff] %v4397_v18  ;;  %5611 = vst [vmem:[#allocation84_spill] sm:$0xff] %v4416_v35 }
  0xac   :  { %v4332_v41 = vsub.f32 %v4188_v60, %v5584_v9  ;;  %5589 = vst [vmem:[#allocation68_spill] sm:$0xff] %v4348_v19  ;;  %v5590_v60 = vand.u32 4294901760, %v4216_v15  ;;  %v4358_v9 = vsub.f32 %v4227_v5, %v5592_v61  ;;  %v4381_v61 = vsub.f32 %v4264_v33, %v842_v43 }
  0xad   :  { %5596 = vst [vmem:[#allocation71_spill] sm:$0xff] %v4368_v38  ;;  %v4387_v6 = vsub.f32 %v4268_v50, %v1697_v30  ;;  %v4389_v29 = vsub.f32 %v763_v14, %v1701_v58  ;;  %v4391_v47 = vsub.f32 %v756_v0, %v844_v56  ;;  %v4401_v33 = vsub.f32 %v769_v17, %v854_v31  ;;  %v5618_v31 = vld [vmem:[#allocation18_spill] sm:$0xff]  ;;  %v5621_v14 = vld [vmem:[#allocation23_spill] sm:$0xff] }
  0xae   :  { %v4353_v44 = vsub.f32 %v4216_v15, %v5590_v60  ;;  %5593 = vst [vmem:[#allocation70_spill] sm:$0xff] %v4358_v9  ;;  %v4373_v15 = vsub.f32 %v4239_v57, %v5597_v10  ;;  %v5598_v60 = vand.u32 4294901760, %v4241_v12  ;;  %5600 = vst [vmem:[#allocation73_spill] sm:$0xff] %v4381_v61  ;;  %v4393_v57 = vsub.f32 %v760_v59, %v848_v55 }
  0xaf   :  { %5601 = vst [vmem:[#allocation74_spill] sm:$0xff] %v4389_v29  ;;  %5602 = vst [vmem:[#allocation75_spill] sm:$0xff] %v4391_v47  ;;  %v4395_v10 = vsub.f32 %v758_v4, %v1699_v13  ;;  %v4403_v43 = vpack.c.bf16 %v1709_v63, %v1705_v22  ;;  %v4405_v45 = vsub.f32 %v767_v26, %v1705_v22  ;;  %v5617_v22 = vld [vmem:[#allocation15_spill] sm:$0xff]  ;;  %v5307_v59 = vand.u32 4294901760, %v5618_v31 }
  0xb0   :  { %5591 = vst [vmem:[#allocation69_spill] sm:$0xff] %v4353_v44  ;;  %v4378_v5 = vsub.f32 %v4241_v12, %v5598_v60  ;;  %5603 = vst [vmem:[#allocation76_spill] sm:$0xff] %v4393_v57  ;;  %v4399_v12 = vsub.f32 %v765_v3, %v850_v11  ;;  %v4407_v30 = vsub.f32 %v771_v21, %v1709_v63  ;;  %v5615_v63 = vand.u32 4294901760, %v5577_v16 }
  0xb1   :  { %5604 = vst [vmem:[#allocation77_spill] sm:$0xff] %v4395_v10  ;;  %5607 = vst [vmem:[#allocation80_spill] sm:$0xff] %v4403_v43  ;;  %v4409_v58 = vpack.c.bf16 %v856_v49, %v852_v54  ;;  %v4411_v56 = vsub.f32 %v764_v53, %v852_v54  ;;  %v4413_v55 = vsub.f32 %v768_v48, %v856_v49  ;;  %3221 = vmatprep.subr.bf16.mxu0 %v4403_v43  ;;  %v5616_v49 = vld [vmem:[#allocation14_spill] sm:$0xff] }
  0xb2   :  { %5599 = vst [vmem:[#allocation72_spill] sm:$0xff] %v4378_v5  ;;  %5606 = vst [vmem:[#allocation79_spill] sm:$0xff] %v4399_v12  ;;  %v4418_v3 = vsub.f32 %v766_v28, %v1707_v36  ;;  %v4420_v17 = vsub.f32 %v770_v25, %v1711_v2  ;;  %v905_v4 = vsub.f32 %v5575_v24, %v5614_v40  ;;  %v5302_v48 = vand.u32 4294901760, %v5616_v49  ;;  %v5619_v36 = vld [vmem:[#allocation19_spill] sm:$0xff]  ;;  %v5620_v28 = vld [vmem:[#allocation21_spill] sm:$0xff] }
  0xb3   :  { %5608 = vst [vmem:[#allocation81_spill] sm:$0xff] %v4409_v58  ;;  %5609 = vst [vmem:[#allocation82_spill] sm:$0xff] %v4411_v56  ;;  %3031 = vmatpush1.bf16.msra.mxu1 %v4409_v58  ;;  %v917_v54 = vsub.f32 %v5577_v16, %v5615_v63  ;;  %v5301_v21 = vand.u32 4294901760, %v5617_v22  ;;  %3223 = vmatpush1.bf16.msra.mxu0 %v4416_v35  ;;  %v5310_v25 = vand.u32 4294901760, %v5619_v36  ;;  %v5313_v0 = vand.u32 4294901760, %v5620_v28  ;;  %v5683_v16 = vld [vmem:[#allocation42_spill] sm:$0xff] }
  0xb4   :  { %5610 = vst [vmem:[#allocation83_spill] sm:$0xff] %v4413_v55  ;;  %5612 = vst [vmem:[#allocation85_spill] sm:$0xff] %v4418_v3  ;;  %v906_v2 = vand.u32 4294901760, %v905_v4  ;;  %v5317_v11 = vand.u32 4294901760, %v5621_v14  ;;  %v1760_v26 = vsub.f32 %v5616_v49, %v5302_v48  ;;  %v911_v53 = vsub.f32 %v5618_v31, %v5307_v59  ;;  %v5622_v4 = vld [vmem:[#allocation25_spill] sm:$0xff] }
  0xb5   :  { %5613 = vst [vmem:[#allocation86_spill] sm:$0xff] %v4420_v17  ;;  %v918_v13 = vand.u32 4294901760, %v917_v54  ;;  %v1772_v50 = vsub.f32 %v5617_v22, %v5301_v21  ;;  %v923_v1 = vsub.f32 %v5619_v36, %v5310_v25  ;;  %v1766_v60 = vsub.f32 %v5620_v28, %v5313_v0  ;;  %v5623_v0 = vld [vmem:[#allocation26_spill] sm:$0xff]  ;;  %v5624_v28 = vld [vmem:[#allocation29_spill] sm:$0xff] }
  0xb6   :  { %v1778_v40 = vsub.f32 %v5621_v14, %v5317_v11  ;;  %v5321_v63 = vand.u32 4294901760, %v5622_v4  ;;  %v1761_v21 = vand.u32 4294901760, %v1760_v26  ;;  %v912_v35 = vand.u32 4294901760, %v911_v53  ;;  %v5625_v11 = vld [vmem:[#allocation30_spill] sm:$0xff]  ;;  %v5628_v26 = vld [vmem:[#allocation33_spill] sm:$0xff] }
  0xb7   :  { %v3032_v54 = vpack.c.bf16 %v918_v13, %v906_v2  ;;  %v1773_v48 = vand.u32 4294901760, %v1772_v50  ;;  %v924_v58 = vand.u32 4294901760, %v923_v1  ;;  %v1767_v59 = vand.u32 4294901760, %v1766_v60  ;;  %v5632_v60 = vld [vmem:[#allocation40_spill] sm:$0xff]  ;;  %v5681_v49 = vld [vmem:[#allocation37_spill] sm:$0xff] }
  0xb8   :  { %v1779_v43 = vand.u32 4294901760, %v1778_v40  ;;  %v929_v25 = vsub.f32 %v5622_v4, %v5321_v63  ;;  %v5320_v52 = vand.u32 4294901760, %v5623_v0  ;;  %v5322_v36 = vand.u32 4294901760, %v5624_v28  ;;  %v5687_v4 = vld [vmem:[#allocation46_spill] sm:$0xff] }
  0xb9   :  { %3033 = vmatprep.subr.bf16.mxu1 %v3032_v54  ;;  %v3224_v32 = vpack.c.bf16 %v1773_v48, %v1761_v21  ;;  %v5323_v14 = vand.u32 4294901760, %v5625_v11  ;;  %v4461_v31 = vpack.c.bf16 %v924_v58, %v912_v35  ;;  %v5324_v50 = vand.u32 4294901760, %v5628_v26  ;;  %v5629_v58 = vld [vmem:[#allocation34_spill] sm:$0xff] }
  0xba   :  { %v4463_v2 = vpack.c.bf16 %v1779_v43, %v1767_v59  ;;  %v930_v13 = vand.u32 4294901760, %v929_v25  ;;  %v941_v53 = vsub.f32 %v5623_v0, %v5320_v52  ;;  %v1784_v48 = vsub.f32 %v5624_v28, %v5322_v36  ;;  %v5630_v59 = vld [vmem:[#allocation36_spill] sm:$0xff]  ;;  %v5631_v25 = vld [vmem:[#allocation37_spill] sm:$0xff]  ;;  %v5636_v28 = vld [vmem:[#allocation42_spill] sm:$0xff] }
  0xbb   :  { %5626 = vst [vmem:[#allocation26_spill] sm:$0xff] %v4461_v31  ;;  %3225 = vmatprep.subr.bf16.mxu0 %v3224_v32  ;;  %v1796_v21 = vsub.f32 %v5625_v11, %v5323_v14  ;;  %v5326_v35 = vand.u32 4294901760, %v5629_v58  ;;  %v935_v43 = vsub.f32 %v5628_v26, %v5324_v50  ;;  %v5330_v32 = vand.u32 4294901760, %v5630_v59  ;;  %v5635_v26 = vld [vmem:[#allocation41_spill] sm:$0xff] }
  0xbc   :  { %5627 = vst [vmem:[#allocation87_spill] sm:$0xff] %v4463_v2  ;;  %v5332_v1 = vand.u32 4294901760, %v5631_v25  ;;  %v5334_v40 = vand.u32 4294901760, %v5632_v60  ;;  %v942_v54 = vand.u32 4294901760, %v941_v53  ;;  %v1785_v52 = vand.u32 4294901760, %v1784_v48 }
  0xbd   :  { %v1797_v63 = vand.u32 4294901760, %v1796_v21  ;;  %v947_v36 = vsub.f32 %v5629_v58, %v5326_v35  ;;  %v936_v14 = vand.u32 4294901760, %v935_v43  ;;  %v1790_v2 = vsub.f32 %v5630_v59, %v5330_v32 }
  0xbe   :  { %v1802_v50 = vsub.f32 %v5631_v25, %v5332_v1  ;;  %v953_v31 = vsub.f32 %v5632_v60, %v5334_v40  ;;  %v4494_v53 = vpack.c.bf16 %v942_v54, %v930_v13  ;;  %v5335_v35 = vand.u32 4294901760, %v5635_v26  ;;  %v5638_v25 = vld [vmem:[#allocation43_spill] sm:$0xff]  ;;  %v5639_v13 = vld [vmem:[#allocation44_spill] sm:$0xff] }
  0xbf   :  { %v4496_v48 = vpack.c.bf16 %v1797_v63, %v1785_v52  ;;  %v948_v21 = vand.u32 4294901760, %v947_v36  ;;  %v1791_v43 = vand.u32 4294901760, %v1790_v2  ;;  %v5336_v32 = vand.u32 4294901760, %v5636_v28  ;;  %v5641_v63 = vld [vmem:[#allocation45_spill] sm:$0xff]  ;;  %v5642_v2 = vld [vmem:[#allocation46_spill] sm:$0xff] }
  0xc0   :  { %5633 = vst [vmem:[#allocation40_spill] sm:$0xff] %v4494_v53  ;;  %v1803_v58 = vand.u32 4294901760, %v1802_v50  ;;  %v954_v11 = vand.u32 4294901760, %v953_v31  ;;  %v965_v1 = vsub.f32 %v5635_v26, %v5335_v35  ;;  %v5337_v40 = vand.u32 4294901760, %v5638_v25 }
  0xc1   :  { %5634 = vst [vmem:[#allocation88_spill] sm:$0xff] %v4496_v48  ;;  %v4500_v59 = vpack.c.bf16 %v948_v21, %v936_v14  ;;  %v5339_v54 = vand.u32 4294901760, %v5639_v13  ;;  %v1808_v36 = vsub.f32 %v5636_v28, %v5336_v32  ;;  %v5341_v31 = vand.u32 4294901760, %v5641_v63 }
  0xc2   :  { %v4507_v52 = vpack.c.bf16 %v1803_v58, %v1791_v43  ;;  %v5345_v50 = vand.u32 4294901760, %v5642_v2  ;;  %v966_v14 = vand.u32 4294901760, %v965_v1  ;;  %v1820_v21 = vsub.f32 %v5638_v25, %v5337_v40  ;;  %v5644_v1 = vld [vmem:[#allocation48_spill] sm:$0xff] }
  0xc3   :  { %5637 = vst [vmem:[#allocation89_spill] sm:$0xff] %v4500_v59  ;;  %v959_v35 = vsub.f32 %v5639_v13, %v5339_v54  ;;  %v5643_v59 = vld [vmem:[#allocation47_spill] sm:$0xff]  ;;  %v1809_v43 = vand.u32 4294901760, %v1808_v36  ;;  %v971_v32 = vsub.f32 %v5641_v63, %v5341_v31  ;;  %v5349_v48 = vand.u32 4294901760, %v5644_v1  ;;  %v5646_v63 = vld [vmem:[#allocation49_spill] sm:$0xff] }
  0xc4   :  { %5640 = vst [vmem:[#allocation90_spill] sm:$0xff] %v4507_v52  ;;  %v5347_v58 = vand.u32 4294901760, %v5643_v59  ;;  %v1814_v52 = vsub.f32 %v5642_v2, %v5345_v50  ;;  %v4528_v53 = vpack.c.bf16 %v966_v14, %v954_v11  ;;  %v1821_v40 = vand.u32 4294901760, %v1820_v21  ;;  %v5648_v2 = vld [vmem:[#allocation50_spill] sm:$0xff] }
  0xc5   :  { %v960_v25 = vand.u32 4294901760, %v959_v35  ;;  %v972_v13 = vand.u32 4294901760, %v971_v32  ;;  %v977_v31 = vsub.f32 %v5644_v1, %v5349_v48  ;;  %v5348_v28 = vand.u32 4294901760, %v5646_v63 }
  0xc6   :  { %5645 = vst [vmem:[#allocation47_spill] sm:$0xff] %v4528_v53  ;;  %v1826_v54 = vsub.f32 %v5643_v59, %v5347_v58  ;;  %v1815_v36 = vand.u32 4294901760, %v1814_v52  ;;  %v4537_v26 = vpack.c.bf16 %v1821_v40, %v1809_v43  ;;  %v5350_v11 = vand.u32 4294901760, %v5648_v2  ;;  %v5650_v52 = vld [vmem:[#allocation51_spill] sm:$0xff]  ;;  %v5652_v43 = vld [vmem:[#allocation52_spill] sm:$0xff] }
  0xc7   :  { %v5351_v14 = vand.u32 4294901760, %v3960_v62  ;;  %v4541_v35 = vpack.c.bf16 %v972_v13, %v960_v25  ;;  %v978_v21 = vand.u32 4294901760, %v977_v31  ;;  %v989_v32 = vsub.f32 %v5646_v63, %v5348_v28  ;;  %v5653_v28 = vld [vmem:[#allocation53_spill] sm:$0xff] }
  0xc8   :  { %5647 = vst [vmem:[#allocation48_spill] sm:$0xff] %v4537_v26  ;;  %v1827_v50 = vand.u32 4294901760, %v1826_v54  ;;  %v5352_v58 = vand.u32 4294901760, %v5650_v52  ;;  %v1832_v40 = vsub.f32 %v5648_v2, %v5350_v11  ;;  %v5354_v25 = vand.u32 4294901760, %v5652_v43 }
  0xc9   :  { %5649 = vst [vmem:[#allocation49_spill] sm:$0xff] %v4541_v35  ;;  %v1844_v54 = vsub.f32 %v3960_v62, %v5351_v14  ;;  %v990_v13 = vand.u32 4294901760, %v989_v32  ;;  %v5355_v48 = vand.u32 4294901760, %v5653_v28  ;;  %v5358_v35 = vand.u32 4294901760, %v4302_v23 }
  0xca   :  { %v4547_v53 = vpack.c.bf16 %v1827_v50, %v1815_v36  ;;  %v983_v31 = vsub.f32 %v5650_v52, %v5352_v58  ;;  %v5360_v50 = vand.u32 4294901760, %v3990_v42  ;;  %v1833_v36 = vand.u32 4294901760, %v1832_v40 }
  0xcb   :  { %v995_v11 = vsub.f32 %v5652_v43, %v5354_v25  ;;  %v4565_v14 = vpack.c.bf16 %v990_v13, %v978_v21  ;;  %v1838_v32 = vsub.f32 %v5653_v28, %v5355_v48  ;;  %v5357_v25 = vand.u32 4294901760, %v4307_v8 }
  0xcc   :  { %5651 = vst [vmem:[#allocation50_spill] sm:$0xff] %v4547_v53  ;;  %v1845_v53 = vand.u32 4294901760, %v1844_v54  ;;  %v984_v26 = vand.u32 4294901760, %v983_v31  ;;  %v1850_v58 = vsub.f32 %v3990_v42, %v5360_v50  ;;  %v1001_v54 = vsub.f32 %v4302_v23, %v5358_v35 }
  0xcd   :  { %5654 = vst [vmem:[#allocation52_spill] sm:$0xff] %v4565_v14  ;;  %v996_v40 = vand.u32 4294901760, %v995_v11  ;;  %v1839_v21 = vand.u32 4294901760, %v1838_v32  ;;  %v5359_v31 = vand.u32 4294901760, %v4312_v27  ;;  %v5361_v14 = vand.u32 4294901760, %v4317_v46 }
  0xce   :  { %v4573_v52 = vpack.c.bf16 %v1845_v53, %v1833_v36  ;;  %v1851_v13 = vand.u32 4294901760, %v1850_v58  ;;  %v1002_v28 = vand.u32 4294901760, %v1001_v54  ;;  %v1013_v53 = vsub.f32 %v4307_v8, %v5357_v25 }
  0xcf   :  { %v4581_v48 = vpack.c.bf16 %v996_v40, %v984_v26  ;;  %v5362_v11 = vand.u32 4294901760, %v4322_v34  ;;  %v1856_v32 = vsub.f32 %v4312_v27, %v5359_v31  ;;  %v1868_v58 = vsub.f32 %v4317_v46, %v5361_v14 }
  0xd0   :  { %5655 = vst [vmem:[#allocation91_spill] sm:$0xff] %v4573_v52  ;;  %v4587_v36 = vpack.c.bf16 %v1851_v13, %v1839_v21  ;;  %v5363_v26 = vand.u32 4294901760, %v4327_v7  ;;  %v1014_v40 = vand.u32 4294901760, %v1013_v53  ;;  %v5364_v25 = vand.u32 4294901760, %v4332_v41 }
  0xd1   :  { %5656 = vst [vmem:[#allocation92_spill] sm:$0xff] %v4581_v48  ;;  %v1007_v54 = vsub.f32 %v4322_v34, %v5362_v11  ;;  %v5368_v21 = vand.u32 4294901760, %v4337_v51  ;;  %v1857_v13 = vand.u32 4294901760, %v1856_v32  ;;  %v1869_v35 = vand.u32 4294901760, %v1868_v58 }
  0xd2   :  { %5657 = vst [vmem:[#allocation93_spill] sm:$0xff] %v4587_v36  ;;  %v1019_v31 = vsub.f32 %v4327_v7, %v5363_v26  ;;  %v5366_v50 = vand.u32 4294901760, %v4343_v20  ;;  %v4605_v14 = vpack.c.bf16 %v1014_v40, %v1002_v28  ;;  %v1862_v53 = vsub.f32 %v4332_v41, %v5364_v25 }
  0xd3   :  { %v1008_v36 = vand.u32 4294901760, %v1007_v54  ;;  %v1874_v11 = vsub.f32 %v4337_v51, %v5368_v21  ;;  %v4613_v48 = vpack.c.bf16 %v1869_v35, %v1857_v13  ;;  %v5365_v26 = vand.u32 4294901760, %v4348_v19 }
  0xd4   :  { %5658 = vst [vmem:[#allocation94_spill] sm:$0xff] %v4605_v14  ;;  %v1020_v32 = vand.u32 4294901760, %v1019_v31  ;;  %v1025_v58 = vsub.f32 %v4343_v20, %v5366_v50  ;;  %v1863_v28 = vand.u32 4294901760, %v1862_v53  ;;  %v5367_v54 = vand.u32 4294901760, %v4353_v44 }
  0xd5   :  { %5659 = vst [vmem:[#allocation95_spill] sm:$0xff] %v4613_v48  ;;  %v1875_v40 = vand.u32 4294901760, %v1874_v11  ;;  %v5369_v14 = vand.u32 4294901760, %v4358_v9  ;;  %v1037_v35 = vsub.f32 %v4348_v19, %v5365_v26  ;;  %v5370_v31 = vand.u32 4294901760, %v4363_v39 }
  0xd6   :  { %v4621_v25 = vpack.c.bf16 %v1020_v32, %v1008_v36  ;;  %v1026_v52 = vand.u32 4294901760, %v1025_v58  ;;  %v1880_v53 = vsub.f32 %v4353_v44, %v5367_v54  ;;  %v5371_v36 = vand.u32 4294901760, %v4368_v38 }
  0xd7   :  { %v4627_v13 = vpack.c.bf16 %v1875_v40, %v1863_v28  ;;  %v1892_v11 = vsub.f32 %v4358_v9, %v5369_v14  ;;  %v1038_v32 = vand.u32 4294901760, %v1037_v35  ;;  %v1031_v58 = vsub.f32 %v4363_v39, %v5370_v31 }
  0xd8   :  { %5660 = vst [vmem:[#allocation96_spill] sm:$0xff] %v4621_v25  ;;  %v5372_v26 = vand.u32 4294901760, %v4373_v15  ;;  %v5376_v28 = vand.u32 4294901760, %v4378_v5  ;;  %v1881_v40 = vand.u32 4294901760, %v1880_v53  ;;  %v1043_v54 = vsub.f32 %v4368_v38, %v5371_v36 }
  0xd9   :  { %5661 = vst [vmem:[#allocation97_spill] sm:$0xff] %v4627_v13  ;;  %v1893_v50 = vand.u32 4294901760, %v1892_v11  ;;  %v5374_v21 = vand.u32 4294901760, %v4381_v61  ;;  %v4645_v14 = vpack.c.bf16 %v1038_v32, %v1026_v52  ;;  %v1032_v13 = vand.u32 4294901760, %v1031_v58 }
  0xda   :  { %v1886_v35 = vsub.f32 %v4373_v15, %v5372_v26  ;;  %v1898_v31 = vsub.f32 %v4378_v5, %v5376_v28  ;;  %v1044_v53 = vand.u32 4294901760, %v1043_v54  ;;  %v5373_v36 = vand.u32 4294901760, %v4384_v37 }
  0xdb   :  { %5662 = vst [vmem:[#allocation98_spill] sm:$0xff] %v4645_v14  ;;  %v4653_v25 = vpack.c.bf16 %v1893_v50, %v1881_v40  ;;  %v1049_v11 = vsub.f32 %v4381_v61, %v5374_v21  ;;  %v5375_v58 = vand.u32 4294901760, %v4387_v6  ;;  %v5377_v14 = vand.u32 4294901760, %v4389_v29 }
  0xdc   :  { %v1887_v52 = vand.u32 4294901760, %v1886_v35  ;;  %v1899_v32 = vand.u32 4294901760, %v1898_v31  ;;  %v4661_v26 = vpack.c.bf16 %v1044_v53, %v1032_v13  ;;  %v1061_v50 = vsub.f32 %v4384_v37, %v5373_v36 }
  0xdd   :  { %5663 = vst [vmem:[#allocation99_spill] sm:$0xff] %v4653_v25  ;;  %v1050_v48 = vand.u32 4294901760, %v1049_v11  ;;  %v5378_v54 = vand.u32 4294901760, %v4391_v47  ;;  %v1904_v35 = vsub.f32 %v4387_v6, %v5375_v58  ;;  %v1916_v31 = vsub.f32 %v4389_v29, %v5377_v14 }
  0xde   :  { %5664 = vst [vmem:[#allocation100_spill] sm:$0xff] %v4661_v26  ;;  %v4667_v40 = vpack.c.bf16 %v1899_v32, %v1887_v52  ;;  %v5379_v13 = vand.u32 4294901760, %v4393_v57  ;;  %v1062_v53 = vand.u32 4294901760, %v1061_v50  ;;  %v5380_v36 = vand.u32 4294901760, %v4395_v10 }
  0xdf   :  { %v1055_v11 = vsub.f32 %v4391_v47, %v5378_v54  ;;  %v5385_v52 = vand.u32 4294901760, %v4397_v18  ;;  %v1905_v32 = vand.u32 4294901760, %v1904_v35  ;;  %v1917_v21 = vand.u32 4294901760, %v1916_v31 }
  0xe0   :  { %5665 = vst [vmem:[#allocation101_spill] sm:$0xff] %v4667_v40  ;;  %v1067_v58 = vsub.f32 %v4393_v57, %v5379_v13  ;;  %v5382_v28 = vand.u32 4294901760, %v4399_v12  ;;  %v4685_v14 = vpack.c.bf16 %v1062_v53, %v1050_v48  ;;  %v1910_v50 = vsub.f32 %v4395_v10, %v5380_v36 }
  0xe1   :  { %v1056_v40 = vand.u32 4294901760, %v1055_v11  ;;  %v1922_v54 = vsub.f32 %v4397_v18, %v5385_v52  ;;  %v4693_v26 = vpack.c.bf16 %v1917_v21, %v1905_v32  ;;  %v5381_v13 = vand.u32 4294901760, %v4401_v33 }
  0xe2   :  { %5666 = vst [vmem:[#allocation102_spill] sm:$0xff] %v4685_v14  ;;  %v1068_v35 = vand.u32 4294901760, %v1067_v58  ;;  %v1073_v31 = vsub.f32 %v4399_v12, %v5382_v28  ;;  %v1911_v48 = vand.u32 4294901760, %v1910_v50  ;;  %v5383_v11 = vand.u32 4294901760, %v4405_v45 }
  0xe3   :  { %5667 = vst [vmem:[#allocation103_spill] sm:$0xff] %v4693_v26  ;;  %v1923_v53 = vand.u32 4294901760, %v1922_v54  ;;  %v5384_v14 = vand.u32 4294901760, %v4407_v30  ;;  %v1085_v21 = vsub.f32 %v4401_v33, %v5381_v13  ;;  %v5386_v58 = vand.u32 4294901760, %v4411_v56  ;;  %v5673_v26 = vld [vmem:[#allocation19_spill] sm:$0xff] }
  0xe4   :  { %v4701_v36 = vpack.c.bf16 %v1068_v35, %v1056_v40  ;;  %v1074_v25 = vand.u32 4294901760, %v1073_v31  ;;  %v1928_v50 = vsub.f32 %v4405_v45, %v5383_v11  ;;  %v5387_v40 = vand.u32 4294901760, %v4413_v55 }
  0xe5   :  { %v4707_v32 = vpack.c.bf16 %v1923_v53, %v1911_v48  ;;  %v1940_v54 = vsub.f32 %v4407_v30, %v5384_v14  ;;  %v1086_v35 = vand.u32 4294901760, %v1085_v21  ;;  %v1079_v31 = vsub.f32 %v4411_v56, %v5386_v58 }
  0xe6   :  { %5668 = vst [vmem:[#allocation104_spill] sm:$0xff] %v4701_v36  ;;  %v5390_v13 = vand.u32 4294901760, %v4418_v3  ;;  %v5391_v48 = vand.u32 4294901760, %v4420_v17  ;;  %v1929_v53 = vand.u32 4294901760, %v1928_v50  ;;  %v1091_v11 = vsub.f32 %v4413_v55, %v5387_v40  ;;  %v5672_v36 = vld [vmem:[#allocation18_spill] sm:$0xff]  ;;  %v5689_v40 = vld [vmem:[#allocation53_spill] sm:$0xff] }
  0xe7   :  { %5669 = vst [vmem:[#allocation105_spill] sm:$0xff] %v4707_v32  ;;  %v1941_v28 = vand.u32 4294901760, %v1940_v54  ;;  %v4726_v52 = vpack.c.bf16 %v1086_v35, %v1074_v25  ;;  %v1080_v21 = vand.u32 4294901760, %v1079_v31  ;;  %v5684_v31 = vld [vmem:[#allocation43_spill] sm:$0xff] }
  0xe8   :  { %v1934_v58 = vsub.f32 %v4418_v3, %v5390_v13  ;;  %v1946_v32 = vsub.f32 %v4420_v17, %v5391_v48  ;;  %v1092_v54 = vand.u32 4294901760, %v1091_v11  ;;  %v5676_v48 = vld [vmem:[#allocation29_spill] sm:$0xff]  ;;  %v5685_v13 = vld [vmem:[#allocation44_spill] sm:$0xff] }
  0xe9   :  { %5670 = vst [vmem:[#allocation106_spill] sm:$0xff] %v4726_v52  ;;  %v4734_v50 = vpack.c.bf16 %v1941_v28, %v1929_v53  ;;  %v5677_v28 = vld [vmem:[#allocation30_spill] sm:$0xff]  ;;  %v5678_v11 = vld [vmem:[#allocation33_spill] sm:$0xff]  ;;  %v65_v53 = vld [vmem:[%s5161_s2] sm:$0x1] }
  0xea   :  { %v1935_v25 = vand.u32 4294901760, %v1934_v58  ;;  %v1947_v35 = vand.u32 4294901760, %v1946_v32  ;;  %v4744_v52 = vpack.c.bf16 %v1092_v54, %v1080_v21  ;;  %v5682_v58 = vld [vmem:[#allocation41_spill] sm:$0xff]  ;;  %v5693_v54 = vld [vmem:[#allocation26_spill] sm:$0xff] }
  0xeb   :  { %5671 = vst [vmem:[#allocation107_spill] sm:$0xff] %v4734_v50  ;;  %v5679_v50 = vld [vmem:[#allocation34_spill] sm:$0xff]  ;;  %v5686_v21 = vld [vmem:[#allocation45_spill] sm:$0xff] }
  0xec   :  { %v4752_v14 = vpack.c.bf16 %v1947_v35, %v1935_v25  ;;  %v5688_v25 = vld [vmem:[#allocation51_spill] sm:$0xff] }
 0x160   :  { %v703_v47 = vpop.f32.mrb[0].mxu0 }
 0x161   :  { %v2855_v10 = vpop.f32.mrb[1].mxu0 }
 0x162   :  { %v408_v17 = vpop.f32.mrb[0].mxu1  ;;  %v5698_v10 = vld [vmem:[#allocation89_spill] sm:$0xff] }
 0x163   :  { %v3384_v57 = vadd.f32 %v408_v17, %v65_v53  ;;  %v2750_v22 = vpop.f32.mrb[1].mxu1  ;;  %v5694_v17 = vld [vmem:[#allocation87_spill] sm:$0xff] }
 0x164   :  { %v5699_v22 = vld [vmem:[#allocation90_spill] sm:$0xff]  ;;  %v5700_v53 = vld [vmem:[#allocation47_spill] sm:$0xff] }
 0x165   :  { %v3385_v18 = vadd.f32 %v3384_v57, %v703_v47  ;;  %v5695_v47 = vld [vmem:[#allocation40_spill] sm:$0xff]  ;;  %v5697_v57 = vmov 0.0  }
 0x167   :  { %v707_v35 = vmax.f32 %v3385_v18, 0.0  ;;  %v5696_v18 = vld [vmem:[#allocation88_spill] sm:$0xff] }
 0x169   :  { %v4805_v12 = vand.u32 4294901760, %v707_v35 }
 0x16b   :  { %5691 = vst [vmem:[#allocation18_spill] sm:$0xff] %v4805_v12  ;;  %v4808_v32 = vsub.f32 %v707_v35, %v4805_v12  ;;  %v5704_v35 = vld [vmem:[#allocation52_spill] sm:$0xff] }
 0x16d   :  { %v4811_v24 = vand.u32 4294901760, %v4808_v32 }
 0x16f   :  { %5692 = vst [vmem:[#allocation19_spill] sm:$0xff] %v4811_v24  ;;  %v894_v61 = vsub.f32 %v4808_v32, %v4811_v24  ;;  %v5708_v24 = vld [vmem:[#allocation94_spill] sm:$0xff] }
 0x171   :  { %v895_v3 = vand.u32 4294901760, %v894_v61  ;;  %v5701_v61 = vld [vmem:[#allocation48_spill] sm:$0xff] }
 0x173   :  { %896 = vmatmul.mubr.f32.vlgmr.msra.gmra.mrb[2].mxu1 %v895_v3  ;;  %1751 = vmatmul.mubr.f32.vlgmr.msra.gmra.mrb[2].mxu0 %v895_v3  ;;  %v5702_v3 = vld [vmem:[#allocation49_spill] sm:$0xff] }
 0x174   :  { %3035 = vmatpush1.bf16.msra.mxu1 %v5693_v54  ;;  %3227 = vmatpush1.bf16.msra.mxu0 %v5694_v17  ;;  %v5703_v54 = vld [vmem:[#allocation50_spill] sm:$0xff]  ;;  %v5705_v17 = vld [vmem:[#allocation91_spill] sm:$0xff] }
 0x175   :  { %3037 = vmatprep.subr.bf16.mxu1 %v5695_v47  ;;  %3229 = vmatprep.subr.bf16.mxu0 %v5696_v18  ;;  %v5706_v47 = vld [vmem:[#allocation92_spill] sm:$0xff]  ;;  %v5707_v18 = vld [vmem:[#allocation93_spill] sm:$0xff] }
 0x176   :  { %1126 = vmatprep.mubr.f32.mxu1 %v5697_v57  ;;  %1981 = vmatprep.mubr.f32.mxu0 %v5697_v57 }
 0x178   :  { %3039 = vmatpush1.bf16.msra.mxu1 %v5698_v10  ;;  %3231 = vmatpush1.bf16.msra.mxu0 %v5699_v22  ;;  %v5709_v10 = vld [vmem:[#allocation95_spill] sm:$0xff]  ;;  %v5710_v22 = vld [vmem:[#allocation96_spill] sm:$0xff] }
 0x179   :  { %3041 = vmatprep.subr.bf16.mxu1 %v5700_v53  ;;  %3233 = vmatprep.subr.bf16.mxu0 %v5701_v61  ;;  %v5711_v53 = vld [vmem:[#allocation97_spill] sm:$0xff]  ;;  %v5712_v61 = vld [vmem:[#allocation98_spill] sm:$0xff] }
 0x17c   :  { %3043 = vmatpush1.bf16.msra.mxu1 %v5702_v3  ;;  %3235 = vmatpush1.bf16.msra.mxu0 %v5703_v54  ;;  %v5713_v3 = vld [vmem:[#allocation99_spill] sm:$0xff]  ;;  %v5714_v54 = vld [vmem:[#allocation100_spill] sm:$0xff] }
 0x17d   :  { %3045 = vmatprep.subr.bf16.mxu1 %v5704_v35  ;;  %3237 = vmatprep.subr.bf16.mxu0 %v5705_v17  ;;  %v5715_v35 = vld [vmem:[#allocation101_spill] sm:$0xff]  ;;  %v5716_v17 = vld [vmem:[#allocation102_spill] sm:$0xff] }
 0x180   :  { %3047 = vmatpush1.bf16.msra.mxu1 %v5706_v47  ;;  %3239 = vmatpush1.bf16.msra.mxu0 %v5707_v18  ;;  %v5717_v47 = vld [vmem:[#allocation103_spill] sm:$0xff]  ;;  %v5718_v18 = vld [vmem:[#allocation104_spill] sm:$0xff] }
 0x181   :  { %3049 = vmatprep.subr.bf16.mxu1 %v5708_v24  ;;  %3241 = vmatprep.subr.bf16.mxu0 %v5709_v10  ;;  %v5719_v24 = vld [vmem:[#allocation105_spill] sm:$0xff]  ;;  %v5720_v10 = vld [vmem:[#allocation106_spill] sm:$0xff] }
 0x184   :  { %3051 = vmatpush1.bf16.msra.mxu1 %v5710_v22  ;;  %3243 = vmatpush1.bf16.msra.mxu0 %v5711_v53  ;;  %v5721_v22 = vld [vmem:[#allocation107_spill] sm:$0xff] }
 0x185   :  { %3053 = vmatprep.subr.bf16.mxu1 %v5712_v61  ;;  %3245 = vmatprep.subr.bf16.mxu0 %v5713_v3  ;;  %v5722_v53 = vld [vmem:[#allocation11_spill] sm:$0xff]  ;;  %v5723_v61 = vld [vmem:[#allocation9_spill] sm:$0xff] }
 0x186   :  { %v5724_v3 = vpack.c.bf16 %v5722_v53, %v5723_v61 }
 0x188   :  { %3055 = vmatpush1.bf16.msra.mxu1 %v5714_v54  ;;  %3247 = vmatpush1.bf16.msra.mxu0 %v5715_v35  ;;  %v5725_v54 = vld [vmem:[#allocation15_spill] sm:$0xff]  ;;  %v5726_v35 = vld [vmem:[#allocation14_spill] sm:$0xff] }
 0x189   :  { %3057 = vmatprep.subr.bf16.mxu1 %v5716_v17  ;;  %3249 = vmatprep.subr.bf16.mxu0 %v5717_v47  ;;  %v5727_v17 = vpack.c.bf16 %v5725_v54, %v5726_v35  ;;  %v5728_v47 = vpack.c.bf16 %v5673_v26, %v5672_v36 }
 0x18c   :  { %3059 = vmatpush1.bf16.msra.mxu1 %v5718_v18  ;;  %3251 = vmatpush1.bf16.msra.mxu0 %v5719_v24  ;;  %v5729_v18 = vld [vmem:[#allocation23_spill] sm:$0xff] }
 0x18d   :  { %3061 = vmatprep.subr.bf16.mxu1 %v5720_v10  ;;  %3253 = vmatprep.subr.bf16.mxu0 %v5721_v22  ;;  %v5734_v22 = vpack.c.bf16 %v5677_v28, %v5676_v48 }
 0x190   :  { %3063 = vmatpush1.bf16.msra.mxu1 %v4744_v52  ;;  %3255 = vmatpush1.bf16.msra.mxu0 %v4752_v14  ;;  %v5730_v52 = vld [vmem:[#allocation21_spill] sm:$0xff] }
 0x191   :  { %3065 = vmatprep.subr.bf16.mxu1 %v5724_v3  ;;  %3257 = vmatprep.subr.bf16.mxu0 %v5727_v17  ;;  %v5731_v24 = vpack.c.bf16 %v5729_v18, %v5730_v52  ;;  %v5732_v14 = vld [vmem:[#allocation25_spill] sm:$0xff]  ;;  %v5735_v3 = vpack.c.bf16 %v5679_v50, %v5678_v11  ;;  %v5736_v17 = vld [vmem:[#allocation36_spill] sm:$0xff] }
 0x192   :  { %v5733_v10 = vpack.c.bf16 %v5623_v0, %v5732_v14 }
 0x193   :  { %1128 = vmatmul.mubr.f32.vlgmr.msra.gmra.mrb[2].mxu1 %v4805_v12  ;;  %1983 = vmatmul.mubr.f32.vlgmr.msra.gmra.mrb[2].mxu0 %v4805_v12  ;;  %v5741_v12 = vpack.c.bf16 %v5643_v59, %v5687_v4 }
 0x194   :  { %3067 = vmatpush1.bf16.msra.mxu1 %v5728_v47  ;;  %3259 = vmatpush1.bf16.msra.mxu0 %v5731_v24  ;;  %v5737_v47 = vpack.c.bf16 %v5681_v49, %v5736_v17  ;;  %v5738_v24 = vpack.c.bf16 %v5682_v58, %v5632_v60 }
 0x195   :  { %3069 = vmatprep.subr.bf16.mxu1 %v5733_v10  ;;  %3261 = vmatprep.subr.bf16.mxu0 %v5734_v22  ;;  %v5739_v10 = vpack.c.bf16 %v5684_v31, %v5683_v16  ;;  %v5740_v22 = vpack.c.bf16 %v5686_v21, %v5685_v13 }
 0x196   :  { %1262 = vmatprep.mubr.f32.mxu1 %v5697_v57  ;;  %2117 = vmatprep.mubr.f32.mxu0 %v5697_v57 }
 0x198   :  { %3071 = vmatpush1.bf16.msra.mxu1 %v5735_v3  ;;  %3263 = vmatpush1.bf16.msra.mxu0 %v5737_v47  ;;  %v5742_v3 = vpack.c.bf16 %v5646_v63, %v5644_v1  ;;  %v5743_v47 = vpack.c.bf16 %v3960_v62, %v5648_v2 }
 0x199   :  { %3073 = vmatprep.subr.bf16.mxu1 %v5738_v24  ;;  %3265 = vmatprep.subr.bf16.mxu0 %v5739_v10  ;;  %v5744_v24 = vpack.c.bf16 %v5652_v43, %v5688_v25  ;;  %v5745_v10 = vpack.c.bf16 %v3990_v42, %v5689_v40 }
 0x19c   :  { %3075 = vmatpush1.bf16.msra.mxu1 %v5740_v22  ;;  %3267 = vmatpush1.bf16.msra.mxu0 %v5741_v12  ;;  %v5746_v22 = vpack.c.bf16 %v4307_v8, %v4302_v23  ;;  %v5747_v12 = vpack.c.bf16 %v4317_v46, %v4312_v27 }
 0x19d   :  { %3077 = vmatprep.subr.bf16.mxu1 %v5742_v3  ;;  %3269 = vmatprep.subr.bf16.mxu0 %v5743_v47  ;;  %v5748_v3 = vpack.c.bf16 %v4327_v7, %v4322_v34  ;;  %v5749_v47 = vpack.c.bf16 %v4337_v51, %v4332_v41 }
 0x1a0   :  { %3079 = vmatpush1.bf16.msra.mxu1 %v5744_v24  ;;  %3271 = vmatpush1.bf16.msra.mxu0 %v5745_v10  ;;  %v5750_v24 = vpack.c.bf16 %v4348_v19, %v4343_v20  ;;  %v5751_v10 = vpack.c.bf16 %v4358_v9, %v4353_v44  ;;  %v5758_v19 = vld [vmem:[#allocation75_spill] sm:$0xff]  ;;  %v5761_v44 = vld [vmem:[#allocation77_spill] sm:$0xff] }
 0x1a1   :  { %3081 = vmatprep.subr.bf16.mxu1 %v5746_v22  ;;  %3273 = vmatprep.subr.bf16.mxu0 %v5747_v12  ;;  %v5752_v22 = vpack.c.bf16 %v4368_v38, %v4363_v39  ;;  %v5753_v12 = vpack.c.bf16 %v4378_v5, %v4373_v15 }
 0x1a4   :  { %3083 = vmatpush1.bf16.msra.mxu1 %v5748_v3  ;;  %3275 = vmatpush1.bf16.msra.mxu0 %v5749_v47  ;;  %v5754_v3 = vld [vmem:[#allocation73_spill] sm:$0xff]  ;;  %v5756_v47 = vpack.c.bf16 %v4389_v29, %v4387_v6 }
 0x1a5   :  { %3085 = vmatprep.subr.bf16.mxu1 %v5750_v24  ;;  %3277 = vmatprep.subr.bf16.mxu0 %v5751_v10  ;;  %v5755_v51 = vpack.c.bf16 %v4384_v37, %v5754_v3  ;;  %v5757_v24 = vld [vmem:[#allocation76_spill] sm:$0xff]  ;;  %v5760_v10 = vld [vmem:[#allocation78_spill] sm:$0xff]  ;;  %v5768_v29 = vld [vmem:[#allocation85_spill] sm:$0xff] }
 0x1a6   :  { %v5759_v9 = vpack.c.bf16 %v5757_v24, %v5758_v19  ;;  %v5762_v38 = vpack.c.bf16 %v5760_v10, %v5761_v44  ;;  %v5771_v10 = vld [vmem:[#allocation55_spill] sm:$0xff] }
 0x1a8   :  { %3087 = vmatpush1.bf16.msra.mxu1 %v5752_v22  ;;  %3279 = vmatpush1.bf16.msra.mxu0 %v5753_v12  ;;  %v5763_v22 = vld [vmem:[#allocation79_spill] sm:$0xff]  ;;  %v5765_v12 = vpack.c.bf16 %v4407_v30, %v4405_v45 }
 0x1a9   :  { %3089 = vmatprep.subr.bf16.mxu1 %v5755_v51  ;;  %3281 = vmatprep.subr.bf16.mxu0 %v5756_v47  ;;  %v5764_v5 = vpack.c.bf16 %v4401_v33, %v5763_v22  ;;  %v5766_v51 = vpack.c.bf16 %v4413_v55, %v4411_v56  ;;  %v5767_v47 = vld [vmem:[#allocation86_spill] sm:$0xff]  ;;  %v5775_v55 = vld [vmem:[#allocation13_spill] sm:$0xff] }
 0x1aa   :  { %v5769_v24 = vpack.c.bf16 %v5767_v47, %v5768_v29  ;;  %v5785_v47 = vld [vmem:[#allocation32_spill] sm:$0xff]  ;;  %v5786_v29 = vld [vmem:[#allocation35_spill] sm:$0xff]  ;;  %v5804_v56 = vld [vmem:[#allocation81_spill] sm:$0xff] }
 0x1ac   :  { %3091 = vmatpush1.bf16.msra.mxu1 %v5759_v9  ;;  %3283 = vmatpush1.bf16.msra.mxu0 %v5762_v38  ;;  %v5770_v9 = vld [vmem:[#allocation54_spill] sm:$0xff]  ;;  %v5772_v38 = vld [vmem:[#allocation56_spill] sm:$0xff] }
 0x1ad   :  { %3093 = vmatprep.subr.bf16.mxu1 %v5764_v5  ;;  %3285 = vmatprep.subr.bf16.mxu0 %v5765_v12  ;;  %v5773_v5 = vld [vmem:[#allocation10_spill] sm:$0xff]  ;;  %v5774_v12 = vld [vmem:[#allocation12_spill] sm:$0xff] }
 0x1b0   :  { %3095 = vmatpush1.bf16.msra.mxu1 %v5766_v51  ;;  %3287 = vmatpush1.bf16.msra.mxu0 %v5769_v24  ;;  %v5776_v24 = vld [vmem:[#allocation16_spill] sm:$0xff]  ;;  %v5777_v51 = vld [vmem:[#allocation17_spill] sm:$0xff] }
 0x1b1   :  { %3097 = vmatprep.subr.bf16.mxu1 %v5770_v9  ;;  %3289 = vmatprep.subr.bf16.mxu0 %v5771_v10  ;;  %v5778_v10 = vld [vmem:[#allocation8_spill] sm:$0xff] }
 0x1b2   :  { %v5779_v9 = vld [vmem:[#allocation20_spill] sm:$0xff] }
 0x1b3   :  { %1265 = vmatmul.mubr.f32.vlgmr.msra.gmra.mrb[2].mxu1 %v4808_v32  ;;  %2120 = vmatmul.mubr.f32.vlgmr.msra.gmra.mrb[2].mxu0 %v4808_v32  ;;  %v5780_v32 = vld [vmem:[#allocation22_spill] sm:$0xff] }
 0x1b4   :  { %3099 = vmatpush1.bf16.msra.mxu1 %v5772_v38  ;;  %3291 = vmatpush1.bf16.msra.mxu0 %v5773_v5  ;;  %v5781_v38 = vld [vmem:[#allocation24_spill] sm:$0xff]  ;;  %v5782_v5 = vld [vmem:[#allocation27_spill] sm:$0xff] }
 0x1b5   :  { %3101 = vmatprep.subr.bf16.mxu1 %v5774_v12  ;;  %3293 = vmatprep.subr.bf16.mxu0 %v5775_v55  ;;  %v5783_v12 = vld [vmem:[#allocation28_spill] sm:$0xff]  ;;  %v5784_v55 = vld [vmem:[#allocation31_spill] sm:$0xff] }
 0x1b6   :  { %1367 = vmatprep.mubr.f32.mxu1 %v5697_v57  ;;  %2222 = vmatprep.mubr.f32.mxu0 %v5697_v57 }
 0x1b8   :  { %3103 = vmatpush1.bf16.msra.mxu1 %v5776_v24  ;;  %3295 = vmatpush1.bf16.msra.mxu0 %v5777_v51  ;;  %v5787_v24 = vld [vmem:[#allocation38_spill] sm:$0xff]  ;;  %v5788_v51 = vld [vmem:[#allocation39_spill] sm:$0xff] }
 0x1b9   :  { %3105 = vmatprep.subr.bf16.mxu1 %v5778_v10  ;;  %3297 = vmatprep.subr.bf16.mxu0 %v5779_v9  ;;  %v5789_v10 = vld [vmem:[#allocation57_spill] sm:$0xff]  ;;  %v5790_v9 = vld [vmem:[#allocation58_spill] sm:$0xff] }
 0x1bc   :  { %3107 = vmatpush1.bf16.msra.mxu1 %v5780_v32  ;;  %3299 = vmatpush1.bf16.msra.mxu0 %v5781_v38  ;;  %v5791_v32 = vld [vmem:[#allocation59_spill] sm:$0xff]  ;;  %v5792_v38 = vld [vmem:[#allocation60_spill] sm:$0xff] }
 0x1bd   :  { %3109 = vmatprep.subr.bf16.mxu1 %v5782_v5  ;;  %3301 = vmatprep.subr.bf16.mxu0 %v5783_v12  ;;  %v5793_v5 = vld [vmem:[#allocation61_spill] sm:$0xff]  ;;  %v5794_v12 = vld [vmem:[#allocation62_spill] sm:$0xff] }
 0x1c0   :  { %3111 = vmatpush1.bf16.msra.mxu1 %v5784_v55  ;;  %3303 = vmatpush1.bf16.msra.mxu0 %v5785_v47  ;;  %v5795_v55 = vld [vmem:[#allocation63_spill] sm:$0xff]  ;;  %v5796_v47 = vld [vmem:[#allocation64_spill] sm:$0xff] }
 0x1c1   :  { %3113 = vmatprep.subr.bf16.mxu1 %v5786_v29  ;;  %3305 = vmatprep.subr.bf16.mxu0 %v5787_v24  ;;  %v5797_v29 = vld [vmem:[#allocation65_spill] sm:$0xff]  ;;  %v5798_v24 = vld [vmem:[#allocation66_spill] sm:$0xff] }
 0x1c4   :  { %3115 = vmatpush1.bf16.msra.mxu1 %v5788_v51  ;;  %3307 = vmatpush1.bf16.msra.mxu0 %v5789_v10  ;;  %v5799_v51 = vld [vmem:[#allocation80_spill] sm:$0xff] }
 0x1c5   :  { %3117 = vmatprep.subr.bf16.mxu1 %v5790_v9  ;;  %3309 = vmatprep.subr.bf16.mxu0 %v5791_v32  ;;  %v5800_v9 = vand.u32 4294901760, %v5723_v61  ;;  %v5801_v32 = vand.u32 4294901760, %v5722_v53  ;;  %v5809_v61 = vand.u32 4294901760, %v5729_v18 }
 0x1c7   :  { %v3128_v10 = vpack.c.bf16 %v5801_v32, %v5800_v9  ;;  %v5814_v32 = vld [vmem:[#allocation19_spill] sm:$0xff] }
 0x1c8   :  { %3119 = vmatpush1.bf16.msra.mxu1 %v5792_v38  ;;  %3311 = vmatpush1.bf16.msra.mxu0 %v5793_v5  ;;  %v5802_v38 = vand.u32 4294901760, %v5726_v35  ;;  %v5803_v5 = vand.u32 4294901760, %v5725_v54  ;;  %v5810_v35 = vand.u32 4294901760, %v5732_v14  ;;  %v5811_v54 = vand.u32 4294901760, %v5623_v0 }
 0x1c9   :  { %3121 = vmatprep.subr.bf16.mxu1 %v5794_v12  ;;  %3313 = vmatprep.subr.bf16.mxu0 %v5795_v55  ;;  %v5805_v55 = vld [vmem:[#allocation84_spill] sm:$0xff]  ;;  %v5818_v0 = vand.u32 4294901760, %v5681_v49  ;;  %v5823_v49 = vand.u32 4294901760, %v5685_v13 }
 0x1ca   :  { %v3320_v12 = vpack.c.bf16 %v5803_v5, %v5802_v38  ;;  %v3132_v9 = vpack.c.bf16 %v5811_v54, %v5810_v35  ;;  %v5812_v38 = vand.u32 4294901760, %v5676_v48  ;;  %v5813_v5 = vand.u32 4294901760, %v5677_v28 }
 0x1cb   :  { %v5819_v48 = vand.u32 4294901760, %v5632_v60  ;;  %v5820_v28 = vand.u32 4294901760, %v5682_v58  ;;  %v5825_v60 = vand.u32 4294901760, %v5687_v4  ;;  %v5826_v58 = vand.u32 4294901760, %v5643_v59 }
 0x1cc   :  { %3123 = vmatpush1.bf16.msra.mxu1 %v5796_v47  ;;  %3315 = vmatpush1.bf16.msra.mxu0 %v5797_v29  ;;  %v5806_v29 = vand.u32 4294901760, %v5672_v36  ;;  %v3324_v36 = vpack.c.bf16 %v5813_v5, %v5812_v38  ;;  %v5832_v4 = vand.u32 4294901760, %v5652_v43  ;;  %v5833_v35 = vand.u32 4294901760, %v5689_v40 }
 0x1cd   :  { %3125 = vmatprep.subr.bf16.mxu1 %v5798_v24  ;;  %3317 = vmatprep.subr.bf16.mxu0 %v5799_v51  ;;  %v5807_v24 = vand.u32 4294901760, %v5673_v26  ;;  %v5808_v51 = vand.u32 4294901760, %v5730_v52  ;;  %v5816_v26 = vand.u32 4294901760, %v5679_v50  ;;  %v5817_v52 = vand.u32 4294901760, %v5736_v17 }
 0x1ce   :  { %v5824_v50 = vand.u32 4294901760, %v5686_v21  ;;  %v5831_v21 = vand.u32 4294901760, %v5688_v25  ;;  %v5834_v54 = vand.u32 4294901760, %v3990_v42  ;;  %v5838_v38 = vand.u32 4294901760, %v4317_v46 }
 0x1cf   :  { %v3130_v47 = vpack.c.bf16 %v5807_v24, %v5806_v29  ;;  %v3322_v53 = vpack.c.bf16 %v5809_v61, %v5808_v51  ;;  %v5815_v29 = vand.u32 4294901760, %v5678_v11  ;;  %v3326_v14 = vpack.c.bf16 %v5818_v0, %v5817_v52  ;;  %v5849_v52 = vld [vmem:[#allocation70_spill] sm:$0xff] }
 0x1d0   :  { %3127 = vmatpush1.bf16.msra.mxu1 %v5804_v56  ;;  %3319 = vmatpush1.bf16.msra.mxu0 %v5805_v55  ;;  %v3138_v17 = vpack.c.bf16 %v5824_v50, %v5823_v49  ;;  %v3330_v24 = vpack.c.bf16 %v5826_v58, %v5825_v60  ;;  %v5829_v61 = vand.u32 4294901760, %v5648_v2  ;;  %v3142_v59 = vpack.c.bf16 %v5832_v4, %v5831_v21  ;;  %v5872_v4 = vld [vmem:[#allocation82_spill] sm:$0xff] }
 0x1d1   :  { %3129 = vmatprep.subr.bf16.mxu1 %v3128_v10  ;;  %3321 = vmatprep.subr.bf16.mxu0 %v3320_v12  ;;  %v3134_v18 = vpack.c.bf16 %v5816_v26, %v5815_v29  ;;  %v3136_v10 = vpack.c.bf16 %v5820_v28, %v5819_v48  ;;  %v5822_v12 = vand.u32 4294901760, %v5684_v31  ;;  %v5828_v31 = vand.u32 4294901760, %v5646_v63  ;;  %v5847_v26 = vld [vmem:[#allocation69_spill] sm:$0xff] }
 0x1d2   :  { %v5835_v63 = vand.u32 4294901760, %v4302_v23  ;;  %v5836_v2 = vand.u32 4294901760, %v4307_v8  ;;  %v5839_v43 = vand.u32 4294901760, %v4322_v34  ;;  %v5840_v40 = vand.u32 4294901760, %v4327_v7 }
 0x1d3   :  { %1371 = vmatmul.mubr.f32.vlgmr.msra.gmra.mrb[2].mxu1 %v5814_v32  ;;  %2226 = vmatmul.mubr.f32.vlgmr.msra.gmra.mrb[2].mxu0 %v5814_v32  ;;  %v5841_v5 = vand.u32 4294901760, %v4332_v41  ;;  %v5844_v8 = vand.u32 4294901760, %v4343_v20  ;;  %v5850_v0 = vand.u32 4294901760, %v5849_v52  ;;  %v5851_v7 = vand.u32 4294901760, %v4363_v39  ;;  %v5852_v41 = vld [vmem:[#allocation71_spill] sm:$0xff]  ;;  %v5900_v52 = vld [vmem:[#allocation57_spill] sm:$0xff] }
 0x1d4   :  { %3131 = vmatpush1.bf16.msra.mxu1 %v3130_v47  ;;  %3323 = vmatpush1.bf16.msra.mxu0 %v3322_v53  ;;  %v5821_v47 = vand.u32 4294901760, %v5683_v16  ;;  %v5827_v16 = vand.u32 4294901760, %v5644_v1  ;;  %v5830_v53 = vand.u32 4294901760, %v3960_v62  ;;  %v3334_v1 = vpack.c.bf16 %v5834_v54, %v5833_v35 }
 0x1d5   :  { %3133 = vmatprep.subr.bf16.mxu1 %v3132_v9  ;;  %3325 = vmatprep.subr.bf16.mxu0 %v3324_v36  ;;  %v3144_v62 = vpack.c.bf16 %v5836_v2, %v5835_v63  ;;  %v5837_v9 = vand.u32 4294901760, %v4312_v27  ;;  %v3146_v42 = vpack.c.bf16 %v5840_v40, %v5839_v43  ;;  %v5842_v36 = vld [vmem:[#allocation67_spill] sm:$0xff]  ;;  %v5845_v27 = vld [vmem:[#allocation68_spill] sm:$0xff]  ;;  %v5854_v28 = vand.u32 4294901760, %v4373_v15  ;;  %v5878_v2 = vld [vmem:[#allocation86_spill] sm:$0xff] }
 0x1d6   :  { %v3328_v11 = vpack.c.bf16 %v5822_v12, %v5821_v47  ;;  %1537 = vmatprep.mubr.f32.mxu1 %v5697_v57  ;;  %2392 = vmatprep.mubr.f32.mxu0 %v5697_v57  ;;  %v3140_v51 = vpack.c.bf16 %v5828_v31, %v5827_v16  ;;  %v3332_v13 = vpack.c.bf16 %v5830_v53, %v5829_v61  ;;  %v5843_v32 = vand.u32 4294901760, %v5842_v36  ;;  %v5863_v15 = vld [vmem:[#allocation76_spill] sm:$0xff]  ;;  %v5886_v43 = vld [vmem:[#allocation13_spill] sm:$0xff] }
 0x1d7   :  { %v3336_v25 = vpack.c.bf16 %v5838_v38, %v5837_v9  ;;  %v5846_v29 = vand.u32 4294901760, %v5845_v27  ;;  %v5857_v12 = vand.u32 4294901760, %v5754_v3  ;;  %v5859_v50 = vand.u32 4294901760, %v4387_v6  ;;  %v5883_v9 = vld [vmem:[#allocation56_spill] sm:$0xff]  ;;  %v5884_v38 = vld [vmem:[#allocation10_spill] sm:$0xff] }
 0x1d8   :  { %3135 = vmatpush1.bf16.msra.mxu1 %v3134_v18  ;;  %3327 = vmatpush1.bf16.msra.mxu0 %v3326_v14  ;;  %v3338_v23 = vpack.c.bf16 %v5843_v32, %v5841_v5  ;;  %v5848_v18 = vand.u32 4294901760, %v5847_v26  ;;  %v5853_v14 = vand.u32 4294901760, %v5852_v41  ;;  %v5862_v58 = vand.u32 4294901760, %v5758_v19  ;;  %v5887_v40 = vld [vmem:[#allocation16_spill] sm:$0xff]  ;;  %v5891_v32 = vld [vmem:[#allocation22_spill] sm:$0xff]  ;;  %v5904_v41 = vld [vmem:[#allocation61_spill] sm:$0xff] }
 0x1d9   :  { %3137 = vmatprep.subr.bf16.mxu1 %v3136_v10  ;;  %3329 = vmatprep.subr.bf16.mxu0 %v3328_v11  ;;  %v3148_v46 = vpack.c.bf16 %v5846_v29, %v5844_v8  ;;  %v5855_v10 = vld [vmem:[#allocation72_spill] sm:$0xff]  ;;  %v5858_v11 = vand.u32 4294901760, %v4384_v37  ;;  %v5865_v31 = vand.u32 4294901760, %v5761_v44  ;;  %v5868_v37 = vand.u32 4294901760, %v5763_v22  ;;  %v5874_v44 = vld [vmem:[#allocation83_spill] sm:$0xff]  ;;  %v5898_v26 = vld [vmem:[#allocation38_spill] sm:$0xff] }
 0x1da   :  { %v3340_v34 = vpack.c.bf16 %v5850_v0, %v5848_v18  ;;  %v3150_v48 = vpack.c.bf16 %v5853_v14, %v5851_v7  ;;  %v5856_v47 = vand.u32 4294901760, %v5855_v10  ;;  %v5869_v6 = vand.u32 4294901760, %v4401_v33  ;;  %v5880_v33 = vld [vmem:[#allocation54_spill] sm:$0xff]  ;;  %v5889_v5 = vld [vmem:[#allocation8_spill] sm:$0xff]  ;;  %v5893_v8 = vld [vmem:[#allocation27_spill] sm:$0xff] }
 0x1db   :  { %v3152_v49 = vpack.c.bf16 %v5858_v11, %v5857_v12  ;;  %v5871_v21 = vand.u32 4294901760, %v4407_v30  ;;  %v5875_v35 = vand.u32 4294901760, %v5874_v44  ;;  %v5882_v30 = vld [vmem:[#allocation18_spill] sm:$0xff]  ;;  %v5890_v36 = vld [vmem:[#allocation20_spill] sm:$0xff]  ;;  %v5895_v29 = vld [vmem:[#allocation31_spill] sm:$0xff]  ;;  %v774_v12 = vlaneseq }
 0x1dc   :  { %3139 = vmatpush1.bf16.msra.mxu1 %v3138_v17  ;;  %3331 = vmatpush1.bf16.msra.mxu0 %v3330_v24  ;;  %v3342_v20 = vpack.c.bf16 %v5856_v47, %v5854_v28  ;;  %v5860_v17 = vld [vmem:[#allocation74_spill] sm:$0xff]  ;;  %v5864_v24 = vand.u32 4294901760, %v5863_v15  ;;  %v3156_v53 = vpack.c.bf16 %v5869_v6, %v5868_v37  ;;  %v5894_v27 = vld [vmem:[#allocation28_spill] sm:$0xff]  ;;  %v5899_v18 = vld [vmem:[#allocation39_spill] sm:$0xff] }
 0x1dd   :  { %3141 = vmatprep.subr.bf16.mxu1 %v3140_v51  ;;  %3333 = vmatprep.subr.bf16.mxu0 %v3332_v13  ;;  %v5861_v60 = vand.u32 4294901760, %v5860_v17  ;;  %v5866_v51 = vld [vmem:[#allocation78_spill] sm:$0xff]  ;;  %v5870_v13 = vand.u32 4294901760, %v4405_v45  ;;  %v5881_v45 = vld [vmem:[#allocation55_spill] sm:$0xff]  ;;  %v5903_v7 = vld [vmem:[#allocation60_spill] sm:$0xff]  ;;  %v775_v11 = vshrl.u32 %v774_v12, 7 }
 0x1de   :  { %v3154_v16 = vpack.c.bf16 %v5864_v24, %v5862_v58  ;;  %v5867_v61 = vand.u32 4294901760, %v5866_v51  ;;  %v5901_v0 = vld [vmem:[#allocation58_spill] sm:$0xff]  ;;  %v5907_v28 = vld [vmem:[#allocation64_spill] sm:$0xff]  ;;  %v5908_v10 = vld [vmem:[#allocation65_spill] sm:$0xff]  ;;  %vm2535_vm1 = vcmp.lt.s32.totalorder %v774_v12, 512 }
 0x1df   :  { %v3344_v39 = vpack.c.bf16 %v5861_v60, %v5859_v50  ;;  %v3348_v19 = vpack.c.bf16 %v5871_v21, %v5870_v13  ;;  %v5905_v14 = vld [vmem:[#allocation62_spill] sm:$0xff]  ;;  %v784_v50 = vsub.s32 2, %v775_v11  ;;  %v772_v17 = vld [vmem:[%s5163_s4] sm:$0xf]  ;;  %v780_v60 = vsub.s32 1, %v775_v11 }
 0x1e0   :  { %3143 = vmatpush1.bf16.msra.mxu1 %v3142_v59  ;;  %3335 = vmatpush1.bf16.msra.mxu0 %v3334_v1  ;;  %v3346_v3 = vpack.c.bf16 %v5867_v61, %v5865_v31  ;;  %v5873_v59 = vand.u32 4294901760, %v5872_v4  ;;  %v5876_v1 = vld [vmem:[#allocation85_spill] sm:$0xff]  ;;  %v5909_v47 = vld [vmem:[#allocation66_spill] sm:$0xff]  ;;  %v788_v15 = vsub.s32 3, %v775_v11 }
 0x1e1   :  { %3145 = vmatprep.subr.bf16.mxu1 %v3144_v62  ;;  %3337 = vmatprep.subr.bf16.mxu0 %v3336_v25  ;;  %v5877_v63 = vand.u32 4294901760, %v5876_v1  ;;  %v5879_v62 = vand.u32 4294901760, %v5878_v2  ;;  %v5885_v25 = vld [vmem:[#allocation12_spill] sm:$0xff] }
 0x1e2   :  { %v3158_v54 = vpack.c.bf16 %v5875_v35, %v5873_v59  ;;  %v789_v31 = vrot.slane %v772_v17, %v788_v15 }
 0x1e3   :  { %v3350_v22 = vpack.c.bf16 %v5879_v62, %v5877_v63 }
 0x1e4   :  { %3147 = vmatpush1.bf16.msra.mxu1 %v3146_v42  ;;  %3339 = vmatpush1.bf16.msra.mxu0 %v3338_v23  ;;  %v5888_v42 = vld [vmem:[#allocation17_spill] sm:$0xff]  ;;  %v5892_v23 = vld [vmem:[#allocation24_spill] sm:$0xff] }
 0x1e5   :  { %3149 = vmatprep.subr.bf16.mxu1 %v3148_v46  ;;  %3341 = vmatprep.subr.bf16.mxu0 %v3340_v34  ;;  %v5896_v46 = vld [vmem:[#allocation32_spill] sm:$0xff]  ;;  %v5902_v34 = vld [vmem:[#allocation59_spill] sm:$0xff] }
 0x1e8   :  { %3151 = vmatpush1.bf16.msra.mxu1 %v3150_v48  ;;  %3343 = vmatpush1.bf16.msra.mxu0 %v3342_v20  ;;  %v5906_v48 = vld [vmem:[#allocation63_spill] sm:$0xff]  ;;  %v5910_v20 = vld [vmem:[#allocation80_spill] sm:$0xff] }
 0x1e9   :  { %3153 = vmatprep.subr.bf16.mxu1 %v3152_v49  ;;  %3345 = vmatprep.subr.bf16.mxu0 %v3344_v39  ;;  %v776_v49 = vsub.s32 0, %v775_v11  ;;  %v3485_v39 = vmov 1966171168  }
 0x1ea   :  { %v2511_v58 = vunpack.c.l.s4 %v3485_v39 }
 0x1eb   :  { %v777_v24 = vrot.slane %v772_v17, %v776_v49 }
 0x1ec   :  { %3155 = vmatpush1.bf16.msra.mxu1 %v3154_v16  ;;  %3347 = vmatpush1.bf16.msra.mxu0 %v3346_v3  ;;  %v781_v16 = vrot.slane %v772_v17, %v780_v60 }
 0x1ed   :  { %3157 = vmatprep.subr.bf16.mxu1 %v3156_v53  ;;  %3349 = vmatprep.subr.bf16.mxu0 %v3348_v19 }
 0x1f0   :  { %3159 = vmatpush1.bf16.msra.mxu1 %v3158_v54  ;;  %3351 = vmatpush1.bf16.msra.mxu0 %v3350_v22 }
 0x1f1   :  { %3161 = vmatprep.subr.bf16.mxu1 %v5880_v33  ;;  %3353 = vmatprep.subr.bf16.mxu0 %v5881_v45 }
 0x1f3   :  { %1539 = vmatmul.mubr.f32.vlgmr.msra.gmra.mrb[2].mxu1 %v5882_v30  ;;  %2394 = vmatmul.mubr.f32.vlgmr.msra.gmra.mrb[2].mxu0 %v5882_v30 }
 0x1f4   :  { %3163 = vmatpush1.bf16.msra.mxu1 %v5883_v9  ;;  %3355 = vmatpush1.bf16.msra.mxu0 %v5884_v38 }
 0x1f5   :  { %3165 = vmatprep.subr.bf16.mxu1 %v5885_v25  ;;  %3357 = vmatprep.subr.bf16.mxu0 %v5886_v43 }
 0x1f6   :  { %1641 = vmatprep.mubr.f32.mxu1 %v5697_v57  ;;  %2496 = vmatprep.mubr.f32.mxu0 %v5697_v57  ;;  %v5897_v57 = vld [vmem:[#allocation35_spill] sm:$0xff] }
 0x1f8   :  { %3167 = vmatpush1.bf16.msra.mxu1 %v5887_v40  ;;  %3359 = vmatpush1.bf16.msra.mxu0 %v5888_v42 }
 0x1f9   :  { %3169 = vmatprep.subr.bf16.mxu1 %v5889_v5  ;;  %3361 = vmatprep.subr.bf16.mxu0 %v5890_v36 }
 0x1fc   :  { %3171 = vmatpush1.bf16.msra.mxu1 %v5891_v32  ;;  %3363 = vmatpush1.bf16.msra.mxu0 %v5892_v23 }
 0x1fd   :  { %3173 = vmatprep.subr.bf16.mxu1 %v5893_v8  ;;  %3365 = vmatprep.subr.bf16.mxu0 %v5894_v27 }
 0x200   :  { %3175 = vmatpush1.bf16.msra.mxu1 %v5895_v29  ;;  %3367 = vmatpush1.bf16.msra.mxu0 %v5896_v46 }
 0x201   :  { %3177 = vmatprep.subr.bf16.mxu1 %v5897_v57  ;;  %3369 = vmatprep.subr.bf16.mxu0 %v5898_v26 }
 0x204   :  { %3179 = vmatpush1.bf16.msra.mxu1 %v5899_v18  ;;  %3371 = vmatpush1.bf16.msra.mxu0 %v5900_v52 }
 0x205   :  { %3181 = vmatprep.subr.bf16.mxu1 %v5901_v0  ;;  %3373 = vmatprep.subr.bf16.mxu0 %v5902_v34 }
 0x208   :  { %3183 = vmatpush1.bf16.msra.mxu1 %v5903_v7  ;;  %3375 = vmatpush1.bf16.msra.mxu0 %v5904_v41 }
 0x209   :  { %3185 = vmatprep.subr.bf16.mxu1 %v5905_v14  ;;  %3377 = vmatprep.subr.bf16.mxu0 %v5906_v48 }
 0x20c   :  { %3187 = vmatpush1.bf16.msra.mxu1 %v5907_v28  ;;  %3379 = vmatpush1.bf16.msra.mxu0 %v5908_v10 }
 0x20d   :  { %3189 = vmatprep.subr.bf16.mxu1 %v5909_v47  ;;  %3381 = vmatprep.subr.bf16.mxu0 %v5910_v20 }
 0x210   :  { %3191 = vmatpush1.bf16.msra.mxu1 %v5804_v56  ;;  %3383 = vmatpush1.bf16.msra.mxu0 %v5805_v55  ;;  %v785_v56 = vrot.slane %v772_v17, %v784_v50  ;;  %v2512_v55 = vunpack.c.0.s8 %v2511_v58 }
 0x212   :  { %v2515_v21 = vsub.s32 %v2512_v55, %v775_v11 }
 0x213   :  { %1643 = vmatmul.mubr.f32.vlgmr.msra.gmra.mrb[2].mxu1 %v5882_v30  ;;  %2498 = vmatmul.mubr.f32.vlgmr.msra.gmra.mrb[2].mxu0 %v5882_v30 }
 0x2e6   :  { %v1644_v51 = vpop.f32.mrb[2].mxu1  ;;  %v2499_v61 = vpop.f32.mrb[2].mxu0 }
 0x2e7   :  { %v3386_v3 = vadd.f32 %v1644_v51, %v777_v24  ;;  %v3388_v37 = vadd.f32 %v2499_v61, %v785_v56  ;;  %v1646_v6 = vpop.f32.mrb[3].mxu1  ;;  %v2501_v53 = vpop.f32.mrb[3].mxu0 }
 0x2e8   :  { %v3387_v13 = vadd.f32 %v1646_v6, %v781_v16  ;;  %v3389_v19 = vadd.f32 %v2501_v53, %v789_v31 }
 0x2ea   :  { %v2508_v4 = vcombine.low %v3386_v3, %v3387_v13  ;;  %v2509_v59 = vcombine.low %v3388_v37, %v3389_v19 }
 0x2ec   :  { %v2516_v44 = vrot.slane %v2508_v4, %v2515_v21  ;;  %v2523_v35 = vrot.slane %v2509_v59, %v2515_v21 }
 0x2ee   :  { %v2524_v54 = vcombine.low %v2516_v44, %v2523_v35 }
 0x2f0   :  { %v2531_v1 = vrot.slane %v2524_v54, %v2515_v21 }
 0x2f2   :  { %2537 = vst.msk [vmem:[%s5164_s5] sm:$0xf] %vm2535_vm1, %v2531_v1 }
 0x2f3   :  { %2542 = vsyncpa [#allocation3], 1 }
 0x2f4   :  { %2543 = vsyncpa [#allocation5], 1 }

</bundles_post_ra>
